<compile_context>
chip_gen: v6e
topology: v6e:2x2x1
jax: 0.10.0
libtpu: 0.0.40
codegen_flags: <defaults>
</compile_context>

<pallas_src>
import jax
import jax.numpy as jnp
from jax.experimental import pallas as pl
from jax.experimental.pallas import tpu as pltpu


def mlp_kernel(x_ref, w1_ref, b1_ref, w2_ref, b2_ref, w3_ref, b3_ref, o_ref):
    # bf16 cast of x happens here (VMEM -> vregs), not as a separate XLA pass.
    x = x_ref[...].astype(jnp.bfloat16)
    # Layer 1: Linear (bf16 in, f32 MXU accumulation) + bias + ReLU in f32.
    h1 = jnp.dot(x, w1_ref[...], preferred_element_type=jnp.float32)
    h1 = jnp.maximum(h1 + b1_ref[...], 0.0)
    # Layer 2: Linear + ReLU.
    h2 = jnp.dot(h1.astype(jnp.bfloat16), w2_ref[...],
                 preferred_element_type=jnp.float32)
    h2 = jnp.maximum(h2 + b2_ref[...], 0.0)
    # Classifier head: Linear (no activation).
    out = jnp.dot(h2.astype(jnp.bfloat16), w3_ref[...],
                  preferred_element_type=jnp.float32)
    o_ref[...] = (out + b3_ref[...]).astype(o_ref.dtype)


def _round_up(n, m):
    return ((n + m - 1) // m) * m


def _pad_axis(a, axis, target):
    pad = target - a.shape[axis]
    if pad == 0:
        return a
    widths = [(0, 0)] * a.ndim
    widths[axis] = (0, pad)
    return jnp.pad(a, widths)


def prepare_params(w1, b1, w2, b2, w3, b3):
    """Pad feature dims to 128 lanes and cast weights to bf16 -- ONCE.

    Call this at parameter-load time so the pad/convert fusions do not re-read
    the weights from HBM on every forward call.

    Weights are stored [fan_in, fan_out] (transpose of PyTorch's [out, in]).
    W1's K dim is intentionally left at the native in_features so x can be
    passed to the kernel unpadded.
    Returns (params_tuple, out_features).
    """
    h1_f = w1.shape[1]
    h2_f = w2.shape[1]
    out_f = w3.shape[1]
    h1_p = _round_up(h1_f, 128)
    h2_p = _round_up(h2_f, 128)
    out_p = _round_up(out_f, 128)

    bf16 = jnp.bfloat16
    w1p = _pad_axis(w1, 1, h1_p).astype(bf16)                       # (in_f, h1_p)
    w2p = _pad_axis(_pad_axis(w2, 0, h1_p), 1, h2_p).astype(bf16)   # (h1_p, h2_p)
    w3p = _pad_axis(_pad_axis(w3, 0, h2_p), 1, out_p).astype(bf16)  # (h2_p, out_p)
    b1p = _pad_axis(b1.reshape(1, -1).astype(jnp.float32), 1, h1_p)
    b2p = _pad_axis(b2.reshape(1, -1).astype(jnp.float32), 1, h2_p)
    b3p = _pad_axis(b3.reshape(1, -1).astype(jnp.float32), 1, out_p)
    return (w1p, b1p, w2p, b2p, w3p, b3p), out_f


def _choose_tile_b(batch, requested):
    if requested is not None:
        return requested
    # v5e/v6e: single grid step up to 1024 rows (per-step overhead dominates,
    # compute cannot hide DMA anyway).  For larger batches cap at 1024 rows.
    # v7x: prefer >= 2 steps (one per TensorCore) -- pass tile_b explicitly,
    # e.g. _round_up(batch // 2, 8).
    if batch <= 1024:
        return batch
    return 1024


def mnist_net_forward(x, params, out_features, *, tile_b=None):
    """Forward pass of MNISTNet.

    x:       [B, in_features] float32 (native width, NOT padded/cast by caller)
    params:  output of prepare_params() (padded bf16 weights, f32 biases)
    Returns  [B, out_features] float32 logits.
    """
    w1p, b1p, w2p, b2p, w3p, b3p = params
    B, in_f = x.shape
    h1_p = w1p.shape[1]
    h2_p = w2p.shape[1]
    out_p = w3p.shape[1]

    tile_b = _choose_tile_b(B, tile_b)
    if tile_b >= B:
        # Whole batch in one block: block dim == full array dim, no padding.
        tile_b = B
        b_p = B
        xp = x
    else:
        b_p = _round_up(B, tile_b)
        xp = _pad_axis(x, 0, b_p)

    grid = (b_p // tile_b,)

    flops = 2 * b_p * (in_f * h1_p + h1_p * h2_p + h2_p * out_p)
    bytes_accessed = (
        xp.size * 4                                   # x read as f32
        + (w1p.size + w2p.size + w3p.size) * 2        # bf16 weights
        + (b1p.size + b2p.size + b3p.size) * 4        # f32 biases
        + b_p * out_p * 4                             # f32 output
    )

    out_padded = pl.pallas_call(
        mlp_kernel,
        out_shape=jax.ShapeDtypeStruct((b_p, out_p), jnp.float32),
        grid=grid,
        in_specs=[
            pl.BlockSpec((tile_b, in_f), lambda i: (i, 0)),   # x: batch-tiled
            pl.BlockSpec((in_f, h1_p), lambda i: (0, 0)),     # W1: VMEM-resident
            pl.BlockSpec((1, h1_p), lambda i: (0, 0)),        # b1
            pl.BlockSpec((h1_p, h2_p), lambda i: (0, 0)),     # W2
            pl.BlockSpec((1, h2_p), lambda i: (0, 0)),        # b2
            pl.BlockSpec((h2_p, out_p), lambda i: (0, 0)),    # W3
            pl.BlockSpec((1, out_p), lambda i: (0, 0)),       # b3
        ],
        out_specs=pl.BlockSpec((tile_b, out_p), lambda i: (i, 0)),
        compiler_params=pltpu.CompilerParams(
            dimension_semantics=("parallel",),   # shards steps on v7x; harmless elsewhere
            vmem_limit_bytes=32 * 1024 * 1024,   # safe on v5e/v6e/v7x
        ),
        cost_estimate=pl.CostEstimate(
            flops=flops, transcendentals=0, bytes_accessed=bytes_accessed),
    )(xp, w1p, b1p, w2p, b2p, w3p, b3p)

    return out_padded[:B, :out_features]


def reference_forward(x, w1, b1, w2, b2, w3, b3):
    # Same bf16-input / f32-accumulation recipe as the kernel, in plain XLA.
    bf16 = jnp.bfloat16
    h1 = jnp.dot(x.astype(bf16), w1.astype(bf16),
                 preferred_element_type=jnp.float32) + b1
    h1 = jnp.maximum(h1, 0.0)
    h2 = jnp.dot(h1.astype(bf16), w2.astype(bf16),
                 preferred_element_type=jnp.float32) + b2
    h2 = jnp.maximum(h2, 0.0)
    return jnp.dot(h2.astype(bf16), w3.astype(bf16),
                   preferred_element_type=jnp.float32) + b3


if __name__ == "__main__":
    # MNIST-like shapes: 784 input features, 10 classes.
    batch = 128
    in_features = 784
    dim_hidden1 = 256
    dim_hidden2 = 128
    out_features = 10

    key = jax.random.PRNGKey(0)
    kx, k1, kb1, k2, kb2, k3, kb3 = jax.random.split(key, 7)

    x = jax.random.normal(kx, (batch, in_features), dtype=jnp.float32)

    # PyTorch-nn.Linear-style uniform init; weights stored [fan_in, fan_out].
    def init_linear(kw, kb, fan_in, fan_out):
        bound = 1.0 / (fan_in ** 0.5)
        w = jax.random.uniform(kw, (fan_in, fan_out), jnp.float32, -bound, bound)
        b = jax.random.uniform(kb, (fan_out,), jnp.float32, -bound, bound)
        return w, b

    w1, b1 = init_linear(k1, kb1, in_features, dim_hidden1)
    w2, b2 = init_linear(k2, kb2, dim_hidden1, dim_hidden2)
    w3, b3 = init_linear(k3, kb3, dim_hidden2, out_features)

    # One-time parameter prep (pad + bf16 cast); reused across forward calls.
    params, out_f = prepare_params(w1, b1, w2, b2, w3, b3)
    params = jax.block_until_ready(params)

    out = mnist_net_forward(x, params, out_f)
    out = jax.block_until_ready(out)

    ref = reference_forward(x, w1, b1, w2, b2, w3, b3)
    assert out.shape == (batch, out_features), out.shape
    assert jnp.allclose(out, ref, atol=1e-2, rtol=1e-2), "mismatch vs reference"

    # Sanity check vs a pure-f32 reference (looser tolerance for bf16 matmuls).
    ref_f32 = jnp.maximum(x @ w1 + b1, 0.0)
    ref_f32 = jnp.maximum(ref_f32 @ w2 + b2, 0.0) @ w3 + b3
    assert jnp.allclose(out, ref_f32, atol=5e-2, rtol=5e-2), "mismatch vs f32 reference"

    print("KERNEL_OK")
</pallas_src>

<mosaic_0001>
module attributes {stable_mosaic.version = 11 : i64} {
  func.func @mlp_kernel(%arg0: i32, %arg1: memref<128x784xf32, #tpu.memory_space<vmem>>, %arg2: memref<784x256xbf16, #tpu.memory_space<vmem>>, %arg3: memref<1x256xf32, #tpu.memory_space<vmem>>, %arg4: memref<256x128xbf16, #tpu.memory_space<vmem>>, %arg5: memref<1x128xf32, #tpu.memory_space<vmem>>, %arg6: memref<128x128xbf16, #tpu.memory_space<vmem>>, %arg7: memref<1x128xf32, #tpu.memory_space<vmem>>, %arg8: memref<128x128xf32, #tpu.memory_space<vmem>>) attributes {dimension_semantics = [#tpu.dimension_semantics<parallel>], iteration_bounds = array<i64: 1>, scalar_prefetch = 0 : i64, scratch_operands = 0 : i64, tpu.core_type = #tpu.core_type<tc>, window_params = [{transform_indices = @transform_0, window_bounds = array<i64: 128, 784>}, {pipeline_mode = #tpu.pipeline_mode<synchronous>, transform_indices = @transform_1, window_bounds = array<i64: 784, 256>}, {pipeline_mode = #tpu.pipeline_mode<synchronous>, transform_indices = @transform_2, window_bounds = array<i64: 1, 256>}, {pipeline_mode = #tpu.pipeline_mode<synchronous>, transform_indices = @transform_3, window_bounds = array<i64: 256, 128>}, {pipeline_mode = #tpu.pipeline_mode<synchronous>, transform_indices = @transform_4, window_bounds = array<i64: 1, 128>}, {pipeline_mode = #tpu.pipeline_mode<synchronous>, transform_indices = @transform_5, window_bounds = array<i64: 128, 128>}, {pipeline_mode = #tpu.pipeline_mode<synchronous>, transform_indices = @transform_6, window_bounds = array<i64: 1, 128>}, {transform_indices = @transform_7, window_bounds = array<i64: 128, 128>}]} {
    %c0 = arith.constant 0 : index
    %c0_0 = arith.constant 0 : index
    %0 = vector.load %arg1[%c0, %c0_0] : memref<128x784xf32, #tpu.memory_space<vmem>>, vector<128x784xf32>
    %1 = arith.truncf %0 : vector<128x784xf32> to vector<128x784xbf16>
    %c0_1 = arith.constant 0 : index
    %c0_2 = arith.constant 0 : index
    %2 = vector.load %arg2[%c0_1, %c0_2] : memref<784x256xbf16, #tpu.memory_space<vmem>>, vector<784x256xbf16>
    %cst = arith.constant dense<0.000000e+00> : vector<128x256xf32>
    %3 = tpu.matmul %1, %2, %cst {dimension_numbers = #tpu.dot_dimension_numbers<[1], [0], [0], [1], [0, 0, 1, 1], [], []>} : vector<128x784xbf16>, vector<784x256xbf16>, vector<128x256xf32> -> vector<128x256xf32>
    %c0_3 = arith.constant 0 : index
    %c0_4 = arith.constant 0 : index
    %4 = vector.load %arg3[%c0_3, %c0_4] : memref<1x256xf32, #tpu.memory_space<vmem>>, vector<1x256xf32>
    %5 = vector.broadcast %4 : vector<1x256xf32> to vector<128x256xf32>
    %6 = arith.addf %3, %5 : vector<128x256xf32>
    %cst_5 = arith.constant 0.000000e+00 : f32
    %7 = vector.broadcast %cst_5 : f32 to vector<128x256xf32>
    %8 = arith.maximumf %6, %7 : vector<128x256xf32>
    %9 = arith.truncf %8 : vector<128x256xf32> to vector<128x256xbf16>
    %c0_6 = arith.constant 0 : index
    %c0_7 = arith.constant 0 : index
    %10 = vector.load %arg4[%c0_6, %c0_7] : memref<256x128xbf16, #tpu.memory_space<vmem>>, vector<256x128xbf16>
    %cst_8 = arith.constant dense<0.000000e+00> : vector<128x128xf32>
    %11 = tpu.matmul %9, %10, %cst_8 {dimension_numbers = #tpu.dot_dimension_numbers<[1], [0], [0], [1], [0, 0, 1, 1], [], []>} : vector<128x256xbf16>, vector<256x128xbf16>, vector<128x128xf32> -> vector<128x128xf32>
    %c0_9 = arith.constant 0 : index
    %c0_10 = arith.constant 0 : index
    %12 = vector.load %arg5[%c0_9, %c0_10] : memref<1x128xf32, #tpu.memory_space<vmem>>, vector<1x128xf32>
    %13 = vector.broadcast %12 : vector<1x128xf32> to vector<128x128xf32>
    %14 = arith.addf %11, %13 : vector<128x128xf32>
    %cst_11 = arith.constant 0.000000e+00 : f32
    %15 = vector.broadcast %cst_11 : f32 to vector<128x128xf32>
    %16 = arith.maximumf %14, %15 : vector<128x128xf32>
    %17 = arith.truncf %16 : vector<128x128xf32> to vector<128x128xbf16>
    %c0_12 = arith.constant 0 : index
    %c0_13 = arith.constant 0 : index
    %18 = vector.load %arg6[%c0_12, %c0_13] : memref<128x128xbf16, #tpu.memory_space<vmem>>, vector<128x128xbf16>
    %cst_14 = arith.constant dense<0.000000e+00> : vector<128x128xf32>
    %19 = tpu.matmul %17, %18, %cst_14 {dimension_numbers = #tpu.dot_dimension_numbers<[1], [0], [0], [1], [0, 0, 1, 1], [], []>} : vector<128x128xbf16>, vector<128x128xbf16>, vector<128x128xf32> -> vector<128x128xf32>
    %c0_15 = arith.constant 0 : index
    %c0_16 = arith.constant 0 : index
    %20 = vector.load %arg7[%c0_15, %c0_16] : memref<1x128xf32, #tpu.memory_space<vmem>>, vector<1x128xf32>
    %21 = vector.broadcast %20 : vector<1x128xf32> to vector<128x128xf32>
    %22 = arith.addf %19, %21 : vector<128x128xf32>
    %c0_17 = arith.constant 0 : index
    %c0_18 = arith.constant 0 : index
    %23 = vector.load %arg8[%c0_17, %c0_18] : memref<128x128xf32, #tpu.memory_space<vmem>>, vector<128x128xf32>
    tpu.vector_store %arg8[%c0_17, %c0_18], %22 {strides = array<i32>} : memref<128x128xf32, #tpu.memory_space<vmem>>, vector<128x128xf32>,
    return
  }
  func.func @transform_0(%arg0: i32) -> (i32, i32) {
    %c0_i32 = arith.constant 0 : i32
    %c0_i32_0 = arith.constant 0 : i32
    return %arg0, %c0_i32 : i32, i32
  }
  func.func @transform_1(%arg0: i32) -> (i32, i32) {
    %c0_i32 = arith.constant 0 : i32
    %c0_i32_0 = arith.constant 0 : i32
    %c0_i32_1 = arith.constant 0 : i32
    return %c0_i32, %c0_i32_0 : i32, i32
  }
  func.func @transform_2(%arg0: i32) -> (i32, i32) {
    %c0_i32 = arith.constant 0 : i32
    %c0_i32_0 = arith.constant 0 : i32
    %c0_i32_1 = arith.constant 0 : i32
    return %c0_i32, %c0_i32_0 : i32, i32
  }
  func.func @transform_3(%arg0: i32) -> (i32, i32) {
    %c0_i32 = arith.constant 0 : i32
    %c0_i32_0 = arith.constant 0 : i32
    %c0_i32_1 = arith.constant 0 : i32
    return %c0_i32, %c0_i32_0 : i32, i32
  }
  func.func @transform_4(%arg0: i32) -> (i32, i32) {
    %c0_i32 = arith.constant 0 : i32
    %c0_i32_0 = arith.constant 0 : i32
    %c0_i32_1 = arith.constant 0 : i32
    return %c0_i32, %c0_i32_0 : i32, i32
  }
  func.func @transform_5(%arg0: i32) -> (i32, i32) {
    %c0_i32 = arith.constant 0 : i32
    %c0_i32_0 = arith.constant 0 : i32
    %c0_i32_1 = arith.constant 0 : i32
    return %c0_i32, %c0_i32_0 : i32, i32
  }
  func.func @transform_6(%arg0: i32) -> (i32, i32) {
    %c0_i32 = arith.constant 0 : i32
    %c0_i32_0 = arith.constant 0 : i32
    %c0_i32_1 = arith.constant 0 : i32
    return %c0_i32, %c0_i32_0 : i32, i32
  }
  func.func @transform_7(%arg0: i32) -> (i32, i32) {
    %c0_i32 = arith.constant 0 : i32
    %c0_i32_0 = arith.constant 0 : i32
    return %arg0, %c0_i32 : i32, i32
  }
}

</mosaic_0001>

<bundles_post_ra>
// kernel: tpu_custom_call.1
= control target key start
LH: loop header
LB: loop body
LE: loop exit
PB: predicated region body
PF: predicated region fallthrough
CT: control target
= control target key end

     0   :  { %s3222_s0 = inlined_call_operand.vmem [shape: f32[128,784], index: 0, kind: input, shape index: {}]   ;;  %s3223_s1 = inlined_call_operand.vmem [shape: bf16[784,256], index: 1, kind: input, shape index: {}]   ;;  %s3224_s2 = inlined_call_operand.vmem [shape: f32[1,256], index: 2, kind: input, shape index: {}]   ;;  %s3225_s3 = inlined_call_operand.vmem [shape: bf16[256,128], index: 3, kind: input, shape index: {}]   ;;  %s3226_s4 = inlined_call_operand.vmem [shape: f32[1,128], index: 4, kind: input, shape index: {}]   ;;  %s3227_s5 = inlined_call_operand.vmem [shape: bf16[128,128], index: 5, kind: input, shape index: {}]   ;;  %s3228_s6 = inlined_call_operand.vmem [shape: f32[1,128], index: 6, kind: input, shape index: {}]   ;;  %s3229_s7 = inlined_call_operand.hbm [shape: f32[128,128], index: 7, kind: output, shape index: {}]  }
   0x1   :  { %v2057_v0 = vld [vmem:[%s3223_s1 + $0x74] ss:$8 sps:$4 sm:$0xff]   ;;  %v2061_v2 = vld [vmem:[%s3223_s1 + $0x70] ss:$8 sps:$4 sm:$0xff]   ;;  %v2063_v4 = vld [vmem:[%s3223_s1 + $0x64] ss:$8 sps:$4 sm:$0xff]  }
   0x2   :  { %v2059_v1 = vld [vmem:[%s3223_s1 + $0x174] ss:$8 sps:$4 sm:$0xff]   ;;  %821 = vmatprep.subr.bf16.mxu0 %v2057_v0  ;;  %v2062_v3 = vld [vmem:[%s3223_s1 + $0x170] ss:$8 sps:$4 sm:$0xff]   ;;  %v2065_v5 = vld [vmem:[%s3223_s1 + $0x164] ss:$8 sps:$4 sm:$0xff]  }
   0x3   :  { %934 = vmatprep.subr.bf16.mxu1 %v2059_v1  ;;  %822 = vmatpush1.bf16.msra.mxu0 %v2061_v2  ;;  %v2067_v6 = vld [vmem:[%s3223_s1 + $0x60] ss:$8 sps:$4 sm:$0xff]   ;;  %v2069_v8 = vld [vmem:[%s3223_s1 + $0x54] ss:$8 sps:$4 sm:$0xff]   ;;  %v2073_v10 = vld [vmem:[%s3223_s1 + $0x50] ss:$8 sps:$4 sm:$0xff]  }
   0x4   :  { %935 = vmatpush1.bf16.msra.mxu1 %v2062_v3  ;;  %823 = vmatprep.subr.bf16.mxu0 %v2063_v4  ;;  %v2068_v7 = vld [vmem:[%s3223_s1 + $0x160] ss:$8 sps:$4 sm:$0xff]   ;;  %v2071_v9 = vld [vmem:[%s3223_s1 + $0x154] ss:$8 sps:$4 sm:$0xff]   ;;  %v2074_v11 = vld [vmem:[%s3223_s1 + $0x150] ss:$8 sps:$4 sm:$0xff]  }
   0x5   :  { %936 = vmatprep.subr.bf16.mxu1 %v2065_v5  ;;  %v2075_v12 = vld [vmem:[%s3223_s1 + $0x44] ss:$8 sps:$4 sm:$0xff]   ;;  %v2079_v14 = vld [vmem:[%s3223_s1 + $0x40] ss:$8 sps:$4 sm:$0xff]   ;;  %v2081_v16 = vld [vmem:[%s3223_s1 + $0x34] ss:$8 sps:$4 sm:$0xff]  }
   0x6   :  { %v2077_v13 = vld [vmem:[%s3223_s1 + $0x144] ss:$8 sps:$4 sm:$0xff]   ;;  %v2080_v15 = vld [vmem:[%s3223_s1 + $0x140] ss:$8 sps:$4 sm:$0xff]   ;;  %v2083_v17 = vld [vmem:[%s3223_s1 + $0x134] ss:$8 sps:$4 sm:$0xff]  }
   0x7   :  { %824 = vmatpush1.bf16.msra.mxu0 %v2067_v6  ;;  %v2085_v18 = vld [vmem:[%s3223_s1 + $0x30] ss:$8 sps:$4 sm:$0xff]   ;;  %v2087_v20 = vld [vmem:[%s3223_s1 + $0x24] ss:$8 sps:$4 sm:$0xff]   ;;  %v2091_v22 = vld [vmem:[%s3223_s1 + $0x20] ss:$8 sps:$4 sm:$0xff]  }
   0x8   :  { %937 = vmatpush1.bf16.msra.mxu1 %v2068_v7  ;;  %825 = vmatprep.subr.bf16.mxu0 %v2069_v8  ;;  %v2086_v19 = vld [vmem:[%s3223_s1 + $0x130] ss:$8 sps:$4 sm:$0xff]   ;;  %v2089_v21 = vld [vmem:[%s3223_s1 + $0x124] ss:$8 sps:$4 sm:$0xff]   ;;  %v2092_v23 = vld [vmem:[%s3223_s1 + $0x120] ss:$8 sps:$4 sm:$0xff]  }
   0x9   :  { %938 = vmatprep.subr.bf16.mxu1 %v2071_v9  ;;  %v2093_v24 = vld [vmem:[%s3223_s1 + $0x14] ss:$8 sps:$4 sm:$0xff]   ;;  %v2097_v26 = vld [vmem:[%s3223_s1 + $0x10] ss:$8 sps:$4 sm:$0xff]   ;;  %v2099_v28 = vld [vmem:[%s3223_s1 + $0x4] ss:$8 sps:$4 sm:$0xff]  }
   0xa   :  { %v2095_v25 = vld [vmem:[%s3223_s1 + $0x114] ss:$8 sps:$4 sm:$0xff]   ;;  %v2098_v27 = vld [vmem:[%s3223_s1 + $0x110] ss:$8 sps:$4 sm:$0xff]   ;;  %v2101_v29 = vld [vmem:[%s3223_s1 + $0x104] ss:$8 sps:$4 sm:$0xff]  }
   0xb   :  { %826 = vmatpush1.bf16.msra.mxu0 %v2073_v10  ;;  %v2103_v30 = vld [vmem:[%s3223_s1] ss:$8 sps:$4 sm:$0xff]   ;;  %v2105_v32 = vld [vmem:[%s3223_s1 + $0xf4] ss:$8 sps:$4 sm:$0xff]   ;;  %v2109_v34 = vld [vmem:[%s3223_s1 + $0xf0] ss:$8 sps:$4 sm:$0xff]  }
   0xc   :  { %939 = vmatpush1.bf16.msra.mxu1 %v2074_v11  ;;  %827 = vmatprep.subr.bf16.mxu0 %v2075_v12  ;;  %v2104_v31 = vld [vmem:[%s3223_s1 + $0x100] ss:$8 sps:$4 sm:$0xff]   ;;  %v2107_v33 = vld [vmem:[%s3223_s1 + $0x1f4] ss:$8 sps:$4 sm:$0xff]   ;;  %v2110_v35 = vld [vmem:[%s3223_s1 + $0x1f0] ss:$8 sps:$4 sm:$0xff]  }
   0xd   :  { %940 = vmatprep.subr.bf16.mxu1 %v2077_v13  ;;  %v2111_v36 = vld [vmem:[%s3223_s1 + $0xe4] ss:$8 sps:$4 sm:$0xff]   ;;  %v2115_v38 = vld [vmem:[%s3223_s1 + $0xe0] ss:$8 sps:$4 sm:$0xff]   ;;  %v2117_v40 = vld [vmem:[%s3223_s1 + $0xd4] ss:$8 sps:$4 sm:$0xff]  }
   0xe   :  { %v2113_v37 = vld [vmem:[%s3223_s1 + $0x1e4] ss:$8 sps:$4 sm:$0xff]   ;;  %v2116_v39 = vld [vmem:[%s3223_s1 + $0x1e0] ss:$8 sps:$4 sm:$0xff]   ;;  %v2119_v41 = vld [vmem:[%s3223_s1 + $0x1d4] ss:$8 sps:$4 sm:$0xff]  }
   0xf   :  { %828 = vmatpush1.bf16.msra.mxu0 %v2079_v14  ;;  %v2121_v42 = vld [vmem:[%s3223_s1 + $0xd0] ss:$8 sps:$4 sm:$0xff]   ;;  %v2123_v44 = vld [vmem:[%s3223_s1 + $0xc4] ss:$8 sps:$4 sm:$0xff]   ;;  %v2127_v50 = vld [vmem:[%s3223_s1 + $0xc0] ss:$8 sps:$4 sm:$0xff]  }
  0x10   :  { %941 = vmatpush1.bf16.msra.mxu1 %v2080_v15  ;;  %829 = vmatprep.subr.bf16.mxu0 %v2081_v16  ;;  %v2122_v43 = vld [vmem:[%s3223_s1 + $0x1d0] ss:$8 sps:$4 sm:$0xff]   ;;  %v2125_v45 = vld [vmem:[%s3223_s1 + $0x1c4] ss:$8 sps:$4 sm:$0xff]   ;;  %v2128_v51 = vld [vmem:[%s3223_s1 + $0x1c0] ss:$8 sps:$4 sm:$0xff]  }
  0x11   :  { %942 = vmatprep.subr.bf16.mxu1 %v2083_v17  ;;  %v29_v46 = vld [vmem:[%s3222_s0 + $0x8] sm:$0xff]  ;;  %v36_v47 = vld [vmem:[%s3222_s0 + $0x40] sm:$0xff]  ;;  %v31_v48 = vld [vmem:[%s3222_s0 + $0x18] sm:$0xff] }
  0x12   :  { %v38_v49 = vld [vmem:[%s3222_s0 + $0x50] sm:$0xff]  ;;  %v141_v53 = vpack.c.bf16 %v36_v47, %v29_v46  ;;  %v2135_v58 = vld [vmem:[%s3223_s1 + $0xa4] ss:$8 sps:$4 sm:$0xff]   ;;  %v2139_v60 = vld [vmem:[%s3223_s1 + $0xa0] ss:$8 sps:$4 sm:$0xff]  }
  0x13   :  { %830 = vmatpush1.bf16.msra.mxu0 %v2085_v18  ;;  %v2129_v52 = vld [vmem:[%s3223_s1 + $0xb4] ss:$8 sps:$4 sm:$0xff]   ;;  %v143_v54 = vpack.c.bf16 %v38_v49, %v31_v48  ;;  %v2133_v56 = vld [vmem:[%s3223_s1 + $0xb0] ss:$8 sps:$4 sm:$0xff]   ;;  %v2137_v59 = vld [vmem:[%s3223_s1 + $0x1a4] ss:$8 sps:$4 sm:$0xff]  }
  0x14   :  { %943 = vmatpush1.bf16.msra.mxu1 %v2086_v19  ;;  %831 = vmatprep.subr.bf16.mxu0 %v2087_v20  ;;  %v2131_v55 = vld [vmem:[%s3223_s1 + $0x1b4] ss:$8 sps:$4 sm:$0xff]   ;;  %v2134_v57 = vld [vmem:[%s3223_s1 + $0x1b0] ss:$8 sps:$4 sm:$0xff]   ;;  %v2140_v61 = vld [vmem:[%s3223_s1 + $0x1a0] ss:$8 sps:$4 sm:$0xff]  }
  0x15   :  { %944 = vmatprep.subr.bf16.mxu1 %v2089_v21  ;;  %853 = vmatprep.mubr.bf16.mxu0 %v141_v53  ;;  %v2141_v62 = vld [vmem:[%s3223_s1 + $0x94] ss:$8 sps:$4 sm:$0xff]   ;;  %v2145_v0 = vld [vmem:[%s3223_s1 + $0x90] ss:$8 sps:$4 sm:$0xff]   ;;  %v2147_v2 = vld [vmem:[%s3223_s1 + $0x84] ss:$8 sps:$4 sm:$0xff]  }
  0x16   :  { %966 = vmatprep.mubr.bf16.mxu1 %v143_v54  ;;  %v2143_v63 = vld [vmem:[%s3223_s1 + $0x194] ss:$8 sps:$4 sm:$0xff]   ;;  %v2146_v1 = vld [vmem:[%s3223_s1 + $0x190] ss:$8 sps:$4 sm:$0xff]   ;;  %v2149_v3 = vld [vmem:[%s3223_s1 + $0x184] ss:$8 sps:$4 sm:$0xff]  }
  0x17   :  { %832 = vmatpush1.bf16.msra.mxu0 %v2091_v22  ;;  %v2151_v4 = vld [vmem:[%s3223_s1 + $0x80] ss:$8 sps:$4 sm:$0xff]   ;;  %v35_v7 = vld [vmem:[%s3222_s0 + $0x38] sm:$0xff]  ;;  %v30_v8 = vld [vmem:[%s3222_s0 + $0x10] sm:$0xff] }
  0x18   :  { %945 = vmatpush1.bf16.msra.mxu1 %v2092_v23  ;;  %833 = vmatprep.subr.bf16.mxu0 %v2093_v24  ;;  %v2152_v5 = vld [vmem:[%s3223_s1 + $0x180] ss:$8 sps:$4 sm:$0xff]   ;;  %v2155_v10 = vld [vmem:[%s3223_s1 + $0x274] ss:$8 sps:$4 sm:$0xff]   ;;  %v2153_v17 = vld [vmem:[%s3223_s1 + $0x270] ss:$8 sps:$4 sm:$0xff]  }
  0x19   :  { %946 = vmatprep.subr.bf16.mxu1 %v2095_v25  ;;  %v28_v6 = vld [vmem:[%s3222_s0] sm:$0xff]  ;;  %v37_v9 = vld [vmem:[%s3222_s0 + $0x48] sm:$0xff]  ;;  %v43_v11 = vld [vmem:[%s3222_s0 + $0x78] sm:$0xff] }
  0x1a   :  { %v50_v12 = vld [vmem:[%s3222_s0 + $0xb0] sm:$0xff]  ;;  %v140_v13 = vpack.c.bf16 %v35_v7, %v28_v6  ;;  %v142_v14 = vpack.c.bf16 %v37_v9, %v30_v8  ;;  %v45_v15 = vld [vmem:[%s3222_s0 + $0x88] sm:$0xff]  ;;  %v52_v16 = vld [vmem:[%s3222_s0 + $0xc0] sm:$0xff] }
  0x1b   :  { %834 = vmatpush1.bf16.msra.mxu0 %v2097_v26  ;;  %v2158_v18 = vld [vmem:[%s3223_s1 + $0x264] ss:$8 sps:$4 sm:$0xff]   ;;  %v2156_v19 = vld [vmem:[%s3223_s1 + $0x260] ss:$8 sps:$4 sm:$0xff]   ;;  %v148_v20 = vpack.c.bf16 %v50_v12, %v43_v11  ;;  %v150_v21 = vpack.c.bf16 %v52_v16, %v45_v15  ;;  %v42_v22 = vld [vmem:[%s3222_s0 + $0x70] sm:$0xff] }
  0x1c   :  { %947 = vmatpush1.bf16.msra.mxu1 %v2098_v27  ;;  %835 = vmatprep.subr.bf16.mxu0 %v2099_v28  ;;  %v49_v23 = vld [vmem:[%s3222_s0 + $0xa8] sm:$0xff]  ;;  %v44_v24 = vld [vmem:[%s3222_s0 + $0x80] sm:$0xff]  ;;  %v51_v25 = vld [vmem:[%s3222_s0 + $0xb8] sm:$0xff] }
  0x1d   :  { %948 = vmatprep.subr.bf16.mxu1 %v2101_v29  ;;  %v2161_v26 = vld [vmem:[%s3223_s1 + $0x254] ss:$8 sps:$4 sm:$0xff]   ;;  %v57_v27 = vld [vmem:[%s3222_s0 + $0xe8] sm:$0xff]  ;;  %v147_v28 = vpack.c.bf16 %v49_v23, %v42_v22  ;;  %v149_v29 = vpack.c.bf16 %v51_v25, %v44_v24  ;;  %v80_v48 = vld [vmem:[%s3222_s0 + $0x1a0] sm:$0xff] }
  0x1e   :  { %v73_v47 = vld [vmem:[%s3222_s0 + $0x168] sm:$0xff]  ;;  %v2165_v49 = vld [vmem:[%s3223_s1 + $0x230] ss:$8 sps:$4 sm:$0xff]   ;;  %v84_v6 = vld [vmem:[%s3222_s0 + $0x1c0] sm:$0xff] }
  0x1f   :  { %836 = vmatpush1.bf16.msra.mxu0 %v2103_v30  ;;  %v64_v30 = vld [vmem:[%s3222_s0 + $0x120] sm:$0xff]  ;;  %v164_v53 = vpack.c.bf16 %v80_v48, %v73_v47  ;;  %v70_v54 = vld [vmem:[%s3222_s0 + $0x150] sm:$0xff]  ;;  %v91_v7 = vld [vmem:[%s3222_s0 + $0x1f8] sm:$0xff] }
  0x20   :  { %949 = vmatpush1.bf16.msra.mxu1 %v2104_v31  ;;  %837 = vmatprep.subr.bf16.mxu0 %v2105_v32  ;;  %v59_v31 = vld [vmem:[%s3222_s0 + $0xf8] sm:$0xff]  ;;  %v66_v32 = vld [vmem:[%s3222_s0 + $0x130] sm:$0xff]  ;;  %v93_v9 = vld [vmem:[%s3222_s0 + $0x208] sm:$0xff]  ;;  %v168_v12 = vpack.c.bf16 %v91_v7, %v84_v6 }
  0x21   :  { %950 = vmatprep.subr.bf16.mxu1 %v2107_v33  ;;  %v2159_v33 = vld [vmem:[%s3223_s1 + $0x250] ss:$8 sps:$4 sm:$0xff]   ;;  %v101_v15 = vld [vmem:[%s3222_s0 + $0x248] sm:$0xff]  ;;  %v108_v16 = vld [vmem:[%s3222_s0 + $0x280] sm:$0xff] }
  0x22   :  { %v86_v8 = vld [vmem:[%s3222_s0 + $0x1d0] sm:$0xff]  ;;  %v99_v11 = vld [vmem:[%s3222_s0 + $0x238] sm:$0xff]  ;;  %v105_v23 = vld [vmem:[%s3222_s0 + $0x268] sm:$0xff] }
  0x23   :  { %838 = vmatpush2.bf16.msra.mxu0 %v2109_v34  ;;  %v2164_v34 = vld [vmem:[%s3223_s1 + $0x244] ss:$8 sps:$4 sm:$0xff]   ;;  %v98_v22 = vld [vmem:[%s3222_s0 + $0x230] sm:$0xff]  ;;  %v107_v25 = vld [vmem:[%s3222_s0 + $0x278] sm:$0xff] }
  0x24   :  { %951 = vmatpush2.bf16.msra.mxu1 %v2110_v35  ;;  %839 = vmatprep.subr.bf16.mxu0 %v2111_v36  ;;  %v155_v35 = vpack.c.bf16 %v64_v30, %v57_v27  ;;  %v157_v36 = vpack.c.bf16 %v66_v32, %v59_v31  ;;  %v100_v24 = vld [vmem:[%s3222_s0 + $0x240] sm:$0xff]  ;;  %v113_v27 = vld [vmem:[%s3222_s0 + $0x2a8] sm:$0xff]  ;;  %v115_v30 = vld [vmem:[%s3222_s0 + $0x2b8] sm:$0xff]  ;;  %v175_v32 = vpack.c.bf16 %v105_v23, %v98_v22 }
  0x25   :  { %952 = vmatprep.subr.bf16.mxu1 %v2113_v37  ;;  %v2162_v37 = vld [vmem:[%s3223_s1 + $0x240] ss:$8 sps:$4 sm:$0xff]   ;;  %v122_v31 = vld [vmem:[%s3222_s0 + $0x2f0] sm:$0xff] }
  0x26   :  { %v2189_v47 = vld [vmem:[%s3223_s1 + $0x2b0] ss:$8 sps:$4 sm:$0xff]  }
  0x27   :  { %840 = vmatpush2.bf16.msra.mxu0 %v2115_v38  ;;  %v56_v38 = vld [vmem:[%s3222_s0 + $0xe0] sm:$0xff] }
  0x28   :  { %953 = vmatpush2.bf16.msra.mxu1 %v2116_v39  ;;  %841 = vmatprep.subr.bf16.mxu0 %v2117_v40  ;;  %v63_v39 = vld [vmem:[%s3222_s0 + $0x118] sm:$0xff]  ;;  %v58_v40 = vld [vmem:[%s3222_s0 + $0xf0] sm:$0xff] }
  0x29   :  { %954 = vmatprep.subr.bf16.mxu1 %v2119_v41  ;;  %v65_v41 = vld [vmem:[%s3222_s0 + $0x128] sm:$0xff] }
  0x2a   :  { %v156_v46 = vpack.c.bf16 %v65_v41, %v58_v40  ;;  %v114_v40 = vld [vmem:[%s3222_s0 + $0x2b0] sm:$0xff]  ;;  %v121_v41 = vld [vmem:[%s3222_s0 + $0x2e8] sm:$0xff] }
  0x2b   :  { %842 = vmatpush2.bf16.msra.mxu0 %v2121_v42  ;;  %v2167_v42 = vld [vmem:[%s3223_s1 + $0x234] ss:$8 sps:$4 sm:$0xff]  }
  0x2c   :  { %955 = vmatpush2.bf16.msra.mxu1 %v2122_v43  ;;  %843 = vmatprep.subr.bf16.mxu0 %v2123_v44  ;;  %v71_v43 = vld [vmem:[%s3222_s0 + $0x158] sm:$0xff]  ;;  %v78_v44 = vld [vmem:[%s3222_s0 + $0x190] sm:$0xff] }
  0x2d   :  { %956 = vmatprep.subr.bf16.mxu1 %v2125_v45  ;;  %v154_v45 = vpack.c.bf16 %v63_v39, %v56_v38  ;;  %v112_v38 = vld [vmem:[%s3222_s0 + $0x2a0] sm:$0xff]  ;;  %v119_v39 = vld [vmem:[%s3222_s0 + $0x2d8] sm:$0xff] }
  0x2e   :  { %v182_v48 = vpack.c.bf16 %v119_v39, %v112_v38 }
  0x2f   :  { %844 = vmatpush2.bf16.msra.mxu0 %v2127_v50  ;;  %v2170_v50 = vld [vmem:[%s3223_s1 + $0x224] ss:$8 sps:$4 sm:$0xff]  }
  0x30   :  { %957 = vmatpush2.bf16.msra.mxu1 %v2128_v51  ;;  %845 = vmatprep.subr.bf16.mxu0 %v2129_v52  ;;  %v2168_v51 = vld [vmem:[%s3223_s1 + $0x220] ss:$8 sps:$4 sm:$0xff]   ;;  %v162_v52 = vpack.c.bf16 %v78_v44, %v71_v43  ;;  %v127_v43 = vld [vmem:[%s3222_s0 + $0x318] sm:$0xff]  ;;  %v134_v44 = vld [vmem:[%s3222_s0 + $0x350] sm:$0xff] }
  0x31   :  { %958 = vmatprep.subr.bf16.mxu1 %v2131_v55  ;;  %v77_v55 = vld [vmem:[%s3222_s0 + $0x188] sm:$0xff] }
  0x33   :  { %846 = vmatpush2.bf16.msra.mxu0 %v2133_v56  ;;  %v72_v56 = vld [vmem:[%s3222_s0 + $0x160] sm:$0xff] }
  0x34   :  { %959 = vmatpush2.bf16.msra.mxu1 %v2134_v57  ;;  %847 = vmatprep.subr.bf16.mxu0 %v2135_v58  ;;  %v79_v57 = vld [vmem:[%s3222_s0 + $0x198] sm:$0xff] }
  0x35   :  { %960 = vmatprep.subr.bf16.mxu1 %v2137_v59  ;;  %v2173_v58 = vld [vmem:[%s3223_s1 + $0x214] ss:$8 sps:$4 sm:$0xff]   ;;  %v85_v59 = vld [vmem:[%s3222_s0 + $0x1c8] sm:$0xff] }
  0x37   :  { %848 = vmatpush2.bf16.msra.mxu0 %v2139_v60  ;;  %v161_v60 = vpack.c.bf16 %v77_v55, %v70_v54  ;;  %v126_v54 = vld [vmem:[%s3222_s0 + $0x310] sm:$0xff]  ;;  %v133_v55 = vld [vmem:[%s3222_s0 + $0x348] sm:$0xff] }
  0x38   :  { %961 = vmatpush2.bf16.msra.mxu1 %v2140_v61  ;;  %849 = vmatprep.subr.bf16.mxu0 %v2141_v62  ;;  %v163_v61 = vpack.c.bf16 %v79_v57, %v72_v56  ;;  %v92_v62 = vld [vmem:[%s3222_s0 + $0x200] sm:$0xff]  ;;  %v135_v57 = vld [vmem:[%s3222_s0 + $0x358] sm:$0xff] }
  0x39   :  { %962 = vmatprep.subr.bf16.mxu1 %v2143_v63  ;;  %v87_v63 = vld [vmem:[%s3222_s0 + $0x1d8] sm:$0xff]  ;;  %v128_v56 = vld [vmem:[%s3222_s0 + $0x320] sm:$0xff] }
  0x3b   :  { %850 = vmatpush2.bf16.msra.mxu0 %v2145_v0  ;;  %v94_v0 = vld [vmem:[%s3222_s0 + $0x210] sm:$0xff] }
  0x3c   :  { %963 = vmatpush2.bf16.msra.mxu1 %v2146_v1  ;;  %851 = vmatprep.subr.bf16.mxu0 %v2147_v2  ;;  %v2171_v1 = vld [vmem:[%s3223_s1 + $0x210] ss:$8 sps:$4 sm:$0xff]   ;;  %v2176_v2 = vld [vmem:[%s3223_s1 + $0x204] ss:$8 sps:$4 sm:$0xff]  }
  0x3d   :  { %964 = vmatprep.subr.bf16.mxu1 %v2149_v3  ;;  %v169_v3 = vpack.c.bf16 %v92_v62, %v85_v59  ;;  %v33_v59 = vld [vmem:[%s3222_s0 + $0x28] sm:$0xff]  ;;  %v191_v62 = vpack.c.bf16 %v135_v57, %v128_v56 }
  0x3f   :  { %852 = vmatpush2.bf16.msra.mxu0 %v2151_v4  ;;  %v171_v4 = vpack.c.bf16 %v94_v0, %v87_v63  ;;  %v117_v63 = vld [vmem:[%s3222_s0 + $0x2c8] sm:$0xff]  ;;  %v124_v0 = vld [vmem:[%s3222_s0 + $0x300] sm:$0xff] }
  0x40   :  { %965 = vmatpush2.bf16.msra.mxu1 %v2152_v5  ;;  %1047 = vmatprep.subr.bf16.mxu0 %v2155_v10  ;;  %v2174_v5 = vld [vmem:[%s3223_s1 + $0x200] ss:$8 sps:$4 sm:$0xff]  }
  0x41   :  { %2021 = vmatprep.subr.bf16.mxu1 %v2155_v10  ;;  %v2179_v10 = vld [vmem:[%s3223_s1 + $0x2f4] ss:$8 sps:$4 sm:$0xff]  }
  0x42   :  { %854 = vmatmul.mubr.bf16.vlgmr.msra.gmra.mxu0 %v140_v13  ;;  %v170_v13 = vpack.c.bf16 %v93_v9, %v86_v8 }
  0x43   :  { %967 = vmatmul.mubr.bf16.vlgmr.msra.gmra.mxu1 %v142_v14  ;;  %1048 = vmatpush1.bf16.msra.mxu0 %v2153_v17  ;;  %v106_v14 = vld [vmem:[%s3222_s0 + $0x270] sm:$0xff] }
  0x44   :  { %2037 = vmatpush1.bf16.msra.mxu1 %v2153_v17  ;;  %1049 = vmatprep.subr.bf16.mxu0 %v2158_v18  ;;  %v2177_v17 = vld [vmem:[%s3223_s1 + $0x2f0] ss:$8 sps:$4 sm:$0xff]  }
  0x45   :  { %2022 = vmatprep.subr.bf16.mxu1 %v2158_v18  ;;  %863 = vmatprep.mubr.bf16.mxu0 %v148_v20  ;;  %v2182_v18 = vld [vmem:[%s3223_s1 + $0x2e4] ss:$8 sps:$4 sm:$0xff]   ;;  %v178_v20 = vpack.c.bf16 %v108_v16, %v101_v15 }
  0x46   :  { %976 = vmatprep.mubr.bf16.mxu1 %v150_v21  ;;  %v2180_v21 = vld [vmem:[%s3223_s1 + $0x2e0] ss:$8 sps:$4 sm:$0xff]  }
  0x47   :  { %1050 = vmatpush1.bf16.msra.mxu0 %v2156_v19 }
  0x48   :  { %2038 = vmatpush1.bf16.msra.mxu1 %v2156_v19  ;;  %1051 = vmatprep.subr.bf16.mxu0 %v2161_v26  ;;  %v176_v19 = vpack.c.bf16 %v106_v14, %v99_v11 }
  0x49   :  { %2023 = vmatprep.subr.bf16.mxu1 %v2161_v26  ;;  %v2185_v26 = vld [vmem:[%s3223_s1 + $0x2d4] ss:$8 sps:$4 sm:$0xff]  }
  0x4a   :  { %864 = vmatmul.mubr.bf16.gmra.mxu0 %v147_v28  ;;  %v2183_v28 = vld [vmem:[%s3223_s1 + $0x2d0] ss:$8 sps:$4 sm:$0xff]  }
  0x4b   :  { %977 = vmatmul.mubr.bf16.gmra.mxu1 %v149_v29  ;;  %1052 = vmatpush1.bf16.msra.mxu0 %v2159_v33  ;;  %v120_v29 = vld [vmem:[%s3222_s0 + $0x2e0] sm:$0xff] }
  0x4c   :  { %2039 = vmatpush1.bf16.msra.mxu1 %v2159_v33  ;;  %1053 = vmatprep.subr.bf16.mxu0 %v2164_v34  ;;  %v177_v33 = vpack.c.bf16 %v107_v25, %v100_v24 }
  0x4d   :  { %2024 = vmatprep.subr.bf16.mxu1 %v2164_v34  ;;  %873 = vmatprep.mubr.bf16.mxu0 %v155_v35  ;;  %v2188_v34 = vld [vmem:[%s3223_s1 + $0x2c4] ss:$8 sps:$4 sm:$0xff]   ;;  %v2186_v35 = vld [vmem:[%s3223_s1 + $0x2c0] ss:$8 sps:$4 sm:$0xff]  }
  0x4e   :  { %986 = vmatprep.mubr.bf16.mxu1 %v157_v36  ;;  %v183_v36 = vpack.c.bf16 %v120_v29, %v113_v27 }
  0x4f   :  { %1054 = vmatpush1.bf16.msra.mxu0 %v2162_v37 }
  0x50   :  { %2040 = vmatpush1.bf16.msra.mxu1 %v2162_v37  ;;  %1055 = vmatprep.subr.bf16.mxu0 %v2167_v42  ;;  %v185_v37 = vpack.c.bf16 %v122_v31, %v115_v30 }
  0x51   :  { %2025 = vmatprep.subr.bf16.mxu1 %v2167_v42  ;;  %v2191_v42 = vld [vmem:[%s3223_s1 + $0x2b4] ss:$8 sps:$4 sm:$0xff]  }
  0x52   :  { %874 = vmatmul.mubr.bf16.gmra.mxu0 %v154_v45  ;;  %v129_v45 = vld [vmem:[%s3222_s0 + $0x328] sm:$0xff] }
  0x53   :  { %987 = vmatmul.mubr.bf16.gmra.mxu1 %v156_v46  ;;  %1056 = vmatpush1.bf16.msra.mxu0 %v2165_v49  ;;  %v136_v46 = vld [vmem:[%s3222_s0 + $0x360] sm:$0xff] }
  0x54   :  { %2041 = vmatpush1.bf16.msra.mxu1 %v2165_v49  ;;  %1057 = vmatprep.subr.bf16.mxu0 %v2170_v50  ;;  %v184_v49 = vpack.c.bf16 %v121_v41, %v114_v40 }
  0x55   :  { %2026 = vmatprep.subr.bf16.mxu1 %v2170_v50  ;;  %883 = vmatprep.mubr.bf16.mxu0 %v162_v52  ;;  %v2194_v50 = vld [vmem:[%s3223_s1 + $0x2a4] ss:$8 sps:$4 sm:$0xff]   ;;  %v190_v52 = vpack.c.bf16 %v134_v44, %v127_v43 }
  0x56   :  { %996 = vmatprep.mubr.bf16.mxu1 %v164_v53  ;;  %v192_v53 = vpack.c.bf16 %v136_v46, %v129_v45 }
  0x57   :  { %1058 = vmatpush1.bf16.msra.mxu0 %v2168_v51 }
  0x58   :  { %2042 = vmatpush1.bf16.msra.mxu1 %v2168_v51  ;;  %1059 = vmatprep.subr.bf16.mxu0 %v2173_v58  ;;  %v2192_v51 = vld [vmem:[%s3223_s1 + $0x2a0] ss:$8 sps:$4 sm:$0xff]  }
  0x59   :  { %2027 = vmatprep.subr.bf16.mxu1 %v2173_v58  ;;  %v2197_v58 = vld [vmem:[%s3223_s1 + $0x294] ss:$8 sps:$4 sm:$0xff]  }
  0x5a   :  { %884 = vmatmul.mubr.bf16.gmra.mxu0 %v161_v60  ;;  %v40_v60 = vld [vmem:[%s3222_s0 + $0x60] sm:$0xff] }
  0x5b   :  { %997 = vmatmul.mubr.bf16.gmra.mxu1 %v163_v61  ;;  %1060 = vmatpush1.bf16.msra.mxu0 %v2171_v1  ;;  %v189_v61 = vpack.c.bf16 %v133_v55, %v126_v54 }
  0x5c   :  { %2043 = vmatpush1.bf16.msra.mxu1 %v2171_v1  ;;  %1061 = vmatprep.subr.bf16.mxu0 %v2176_v2 }
  0x5d   :  { %2028 = vmatprep.subr.bf16.mxu1 %v2176_v2  ;;  %893 = vmatprep.mubr.bf16.mxu0 %v169_v3 }
  0x5e   :  { %1006 = vmatprep.mubr.bf16.mxu1 %v171_v4 }
  0x5f   :  { %1062 = vmatpush1.bf16.msra.mxu0 %v2174_v5 }
  0x60   :  { %2044 = vmatpush1.bf16.msra.mxu1 %v2174_v5  ;;  %1063 = vmatprep.subr.bf16.mxu0 %v2179_v10 }
  0x61   :  { %2029 = vmatprep.subr.bf16.mxu1 %v2179_v10 }
  0x62   :  { %894 = vmatmul.mubr.bf16.gmra.mxu0 %v168_v12 }
  0x63   :  { %1007 = vmatmul.mubr.bf16.gmra.mxu1 %v170_v13  ;;  %1064 = vmatpush2.bf16.msra.mxu0 %v2177_v17 }
  0x64   :  { %2045 = vmatpush2.bf16.msra.mxu1 %v2177_v17  ;;  %1065 = vmatprep.subr.bf16.mxu0 %v2182_v18 }
  0x65   :  { %2030 = vmatprep.subr.bf16.mxu1 %v2182_v18  ;;  %903 = vmatprep.mubr.bf16.mxu0 %v176_v19 }
  0x66   :  { %1016 = vmatprep.mubr.bf16.mxu1 %v178_v20 }
  0x67   :  { %1066 = vmatpush2.bf16.msra.mxu0 %v2180_v21 }
  0x68   :  { %2046 = vmatpush2.bf16.msra.mxu1 %v2180_v21  ;;  %1067 = vmatprep.subr.bf16.mxu0 %v2185_v26 }
  0x69   :  { %2031 = vmatprep.subr.bf16.mxu1 %v2185_v26 }
  0x6a   :  { %904 = vmatmul.mubr.bf16.gmra.mxu0 %v175_v32 }
  0x6b   :  { %1017 = vmatmul.mubr.bf16.gmra.mxu1 %v177_v33  ;;  %1068 = vmatpush2.bf16.msra.mxu0 %v2183_v28 }
  0x6c   :  { %2047 = vmatpush2.bf16.msra.mxu1 %v2183_v28  ;;  %1069 = vmatprep.subr.bf16.mxu0 %v2188_v34 }
  0x6d   :  { %2032 = vmatprep.subr.bf16.mxu1 %v2188_v34  ;;  %913 = vmatprep.mubr.bf16.mxu0 %v183_v36 }
  0x6e   :  { %1026 = vmatprep.mubr.bf16.mxu1 %v185_v37 }
  0x6f   :  { %1070 = vmatpush2.bf16.msra.mxu0 %v2186_v35 }
  0x70   :  { %2048 = vmatpush2.bf16.msra.mxu1 %v2186_v35  ;;  %1071 = vmatprep.subr.bf16.mxu0 %v2191_v42 }
  0x71   :  { %2033 = vmatprep.subr.bf16.mxu1 %v2191_v42 }
  0x72   :  { %914 = vmatmul.mubr.bf16.gmra.mxu0 %v182_v48 }
  0x73   :  { %1027 = vmatmul.mubr.bf16.gmra.mxu1 %v184_v49  ;;  %1072 = vmatpush2.bf16.msra.mxu0 %v2189_v47 }
  0x74   :  { %2049 = vmatpush2.bf16.msra.mxu1 %v2189_v47  ;;  %1073 = vmatprep.subr.bf16.mxu0 %v2194_v50 }
  0x75   :  { %2034 = vmatprep.subr.bf16.mxu1 %v2194_v50  ;;  %923 = vmatprep.mubr.bf16.mxu0 %v190_v52 }
  0x76   :  { %1036 = vmatprep.mubr.bf16.mxu1 %v192_v53 }
  0x77   :  { %12 = vsyncpa [#allocation3], 0  ;;  %1074 = vmatpush2.bf16.msra.mxu0 %v2192_v51  ;;  %v2195_v1 = vld [vmem:[%s3223_s1 + $0x290] ss:$8 sps:$4 sm:$0xff]   ;;  %v2200_v2 = vld [vmem:[%s3223_s1 + $0x284] ss:$8 sps:$4 sm:$0xff]   ;;  %v145_v3 = vpack.c.bf16 %v40_v60, %v33_v59  ;;  %v187_v4 = vpack.c.bf16 %v124_v0, %v117_v63 }
  0x78   :  { %2050 = vmatpush2.bf16.msra.mxu1 %v2192_v51  ;;  %1075 = vmatprep.subr.bf16.mxu0 %v2197_v58  ;;  %v2198_v5 = vld [vmem:[%s3223_s1 + $0x280] ss:$8 sps:$4 sm:$0xff]   ;;  %v39_v7 = vld [vmem:[%s3222_s0 + $0x58] sm:$0xff]  ;;  %v2203_v10 = vld [vmem:[%s3223_s1 + $0x304] ss:$8 sps:$4 sm:$0xff]   ;;  %v2250_v30 = vmov 0  }
  0x79   :  { %2035 = vmatprep.subr.bf16.mxu1 %v2197_v58  ;;  %v32_v6 = vld [vmem:[%s3222_s0 + $0x20] sm:$0xff]  ;;  %v123_v9 = vld [vmem:[%s3222_s0 + $0x2f8] sm:$0xff]  ;;  %v54_v12 = vld [vmem:[%s3222_s0 + $0xd0] sm:$0xff]  ;;  %vm796_vm0 = vcmask 130048  }
  0x7a   :  { %924 = vmatmul.mubr.bf16.gmra.mxu0 %v189_v61  ;;  %v116_v8 = vld [vmem:[%s3222_s0 + $0x2c0] sm:$0xff]  ;;  %v47_v11 = vld [vmem:[%s3222_s0 + $0x98] sm:$0xff]  ;;  %v138_v14 = vld [vmem:[%s3222_s0 + $0x370] sm:$0xff]  ;;  %v144_v15 = vpack.c.bf16 %v39_v7, %v32_v6 }
  0x7b   :  { %1037 = vmatmul.mubr.bf16.gmra.mxu1 %v191_v62  ;;  %1076 = vmatpush2.bf16.msra.mxu0 %v2195_v1  ;;  %v131_v13 = vld [vmem:[%s3222_s0 + $0x338] sm:$0xff]  ;;  %v186_v16 = vpack.c.bf16 %v123_v9, %v116_v8  ;;  %v2201_v17 = vld [vmem:[%s3223_s1 + $0x300] ss:$8 sps:$4 sm:$0xff]   ;;  %v152_v18 = vpack.c.bf16 %v54_v12, %v47_v11  ;;  %v46_v20 = vld [vmem:[%s3222_s0 + $0x90] sm:$0xff] }
  0x7c   :  { %2051 = vmatpush2.bf16.msra.mxu1 %v2195_v1  ;;  %1077 = vmatprep.subr.bf16.mxu0 %v2200_v2  ;;  %v194_v19 = vpack.c.bf16 %v138_v14, %v131_v13  ;;  %v53_v21 = vld [vmem:[%s3222_s0 + $0xc8] sm:$0xff]  ;;  %v130_v22 = vld [vmem:[%s3222_s0 + $0x330] sm:$0xff]  ;;  %v68_v25 = vld [vmem:[%s3222_s0 + $0x140] sm:$0xff] }
  0x7d   :  { %2036 = vmatprep.subr.bf16.mxu1 %v2200_v2  ;;  %1079 = vmatprep.mubr.bf16.mxu0 %v145_v3  ;;  %v137_v23 = vld [vmem:[%s3222_s0 + $0x368] sm:$0xff]  ;;  %v151_v26 = vpack.c.bf16 %v53_v21, %v46_v20  ;;  %v60_v29 = vld [vmem:[%s3222_s0 + $0x100] sm:$0xff]  ;;  %v67_v31 = vld [vmem:[%s3222_s0 + $0x138] sm:$0xff] }
  0x7e   :  { %1139 = vmatprep.mubr.bf16.mxu1 %v187_v4  ;;  %v61_v24 = vld [vmem:[%s3222_s0 + $0x108] sm:$0xff]  ;;  %v193_v27 = vpack.c.bf16 %v137_v23, %v130_v22  ;;  %v34_v32 = vld [vmem:[%s3222_s0 + $0x30] sm:$0xff]  ;;  %v75_v34 = vld [vmem:[%s3222_s0 + $0x178] sm:$0xff]  ;;  %v158_v36 = vpack.c.bf16 %v67_v31, %v60_v29 }
  0x7f   :  { %1078 = vmatpush2.bf16.msra.mxu0 %v2198_v5  ;;  %v159_v28 = vpack.c.bf16 %v68_v25, %v61_v24  ;;  %v41_v33 = vld [vmem:[%s3222_s0 + $0x68] sm:$0xff]  ;;  %v82_v35 = vld [vmem:[%s3222_s0 + $0x1b0] sm:$0xff]  ;;  %v48_v41 = vld [vmem:[%s3222_s0 + $0xa0] sm:$0xff] }
  0x80   :  { %2052 = vmatpush2.bf16.msra.mxu1 %v2198_v5  ;;  %v146_v37 = vpack.c.bf16 %v41_v33, %v34_v32  ;;  %v166_v38 = vpack.c.bf16 %v82_v35, %v75_v34  ;;  %v74_v39 = vld [vmem:[%s3222_s0 + $0x170] sm:$0xff]  ;;  %v81_v40 = vld [vmem:[%s3222_s0 + $0x1a8] sm:$0xff]  ;;  %v55_v42 = vld [vmem:[%s3222_s0 + $0xd8] sm:$0xff] }
  0x81   :  { %1174 = vmatprep.subr.bf16.mxu1 %v2203_v10  ;;  %v89_v43 = vld [vmem:[%s3222_s0 + $0x1e8] sm:$0xff]  ;;  %v96_v44 = vld [vmem:[%s3222_s0 + $0x220] sm:$0xff]  ;;  %v165_v45 = vpack.c.bf16 %v81_v40, %v74_v39  ;;  %v153_v46 = vpack.c.bf16 %v55_v42, %v48_v41  ;;  %v95_v49 = vld [vmem:[%s3222_s0 + $0x218] sm:$0xff] }
  0x82   :  { %1080 = vmatmul.mubr.bf16.vlgmr.msra.gmra.mxu0 %v144_v15  ;;  %v173_v47 = vpack.c.bf16 %v96_v44, %v89_v43  ;;  %v88_v48 = vld [vmem:[%s3222_s0 + $0x1e0] sm:$0xff]  ;;  %v62_v50 = vld [vmem:[%s3222_s0 + $0x110] sm:$0xff]  ;;  %v69_v51 = vld [vmem:[%s3222_s0 + $0x148] sm:$0xff] }
  0x83   :  { %1140 = vmatmul.mubr.bf16.vlgmr.msra.gmra.mxu1 %v186_v16  ;;  %1089 = vmatprep.mubr.bf16.mxu0 %v152_v18  ;;  %v103_v52 = vld [vmem:[%s3222_s0 + $0x258] sm:$0xff]  ;;  %v110_v53 = vld [vmem:[%s3222_s0 + $0x290] sm:$0xff]  ;;  %v172_v54 = vpack.c.bf16 %v95_v49, %v88_v48  ;;  %v160_v55 = vpack.c.bf16 %v69_v51, %v62_v50  ;;  %v109_v58 = vld [vmem:[%s3222_s0 + $0x288] sm:$0xff] }
  0x84   :  { %1175 = vmatpush1.bf16.msra.mxu1 %v2201_v17  ;;  %1149 = vmatprep.mubr.bf16.mxu1 %v194_v19  ;;  %v180_v56 = vpack.c.bf16 %v110_v53, %v103_v52  ;;  %v102_v57 = vld [vmem:[%s3222_s0 + $0x250] sm:$0xff]  ;;  %v76_v59 = vld [vmem:[%s3222_s0 + $0x180] sm:$0xff]  ;;  %v83_v60 = vld [vmem:[%s3222_s0 + $0x1b8] sm:$0xff] }
  0x85   :  { %v179_v61 = vpack.c.bf16 %v109_v58, %v102_v57  ;;  %v167_v62 = vpack.c.bf16 %v83_v60, %v76_v59  ;;  %v90_v63 = vld [vmem:[%s3222_s0 + $0x1f0] sm:$0xff]  ;;  %v97_v0 = vld [vmem:[%s3222_s0 + $0x228] sm:$0xff]  ;;  %v104_v2 = vld [vmem:[%s3222_s0 + $0x260] sm:$0xff] }
  0x86   :  { %v174_v1 = vpack.c.bf16 %v97_v0, %v90_v63  ;;  %v111_v3 = vld [vmem:[%s3222_s0 + $0x298] sm:$0xff]  ;;  %v2206_v7 = vld [vmem:[%s3225_s3 + $0x70] sm:$0xff]   ;;  %v125_v10 = vld [vmem:[%s3222_s0 + $0x308] sm:$0xff] }
  0x87   :  { %v2204_v4 = vld [vmem:[%s3225_s3 + $0x78] sm:$0xff]   ;;  %v181_v6 = vpack.c.bf16 %v111_v3, %v104_v2  ;;  %v2207_v8 = vld [vmem:[%s3225_s3 + $0x30] sm:$0xff]   ;;  %v2208_v12 = vld [vmem:[%s3225_s3 + $0x68] sm:$0xff]  }
  0x88   :  { %v2205_v5 = vld [vmem:[%s3225_s3 + $0x38] sm:$0xff]   ;;  %1909 = vmatprep.subr.bf16.mxu0 %v2204_v4  ;;  %v118_v9 = vld [vmem:[%s3222_s0 + $0x2d0] sm:$0xff]  ;;  %v2209_v13 = vld [vmem:[%s3225_s3 + $0x28] sm:$0xff]  }
  0x89   :  { %1910 = vmatpush3.bf16.msra.mxu0 %v2205_v5  ;;  %v188_v11 = vpack.c.bf16 %v125_v10, %v118_v9  ;;  %v132_v14 = vld [vmem:[%s3222_s0 + $0x340] sm:$0xff]  ;;  %v139_v15 = vld [vmem:[%s3222_s0 + $0x378] sm:$0xff]  ;;  %v2214_v21 = vld [vmem:[%s3225_s3 + $0x50] sm:$0xff]  }
  0x8a   :  { %1090 = vmatmul.mubr.bf16.gmra.mxu0 %v151_v26  ;;  %1911 = vmatprep.subr.bf16.mxu0 %v2206_v7  ;;  %v2210_v16 = vld [vmem:[%s3225_s3 + $0x60] sm:$0xff]   ;;  %v195_v18 = vpack.c.bf16 %v139_v15, %v132_v14  ;;  %v2212_v19 = vld [vmem:[%s3225_s3 + $0x58] sm:$0xff]   ;;  %v2215_v22 = vld [vmem:[%s3225_s3 + $0x10] sm:$0xff]  }
  0x8b   :  { %1150 = vmatmul.mubr.bf16.gmra.mxu1 %v193_v27  ;;  %1099 = vmatprep.mubr.bf16.mxu0 %v159_v28  ;;  %v2211_v17 = vld [vmem:[%s3225_s3 + $0x20] sm:$0xff]   ;;  %v2213_v20 = vld [vmem:[%s3225_s3 + $0x18] sm:$0xff]   ;;  %v2216_v23 = vld [vmem:[%s3225_s3 + $0x48] sm:$0xff]   ;;  %v296_v27 = vlaneseq }
  0x8c   :  { %1192 = vmatprep.mubr.bf16.mxu1 %v2250_v30  ;;  %v2217_v24 = vld [vmem:[%s3225_s3 + $0x8] sm:$0xff]   ;;  %v2218_v25 = vld [vmem:[%s3225_s3 + $0x40] sm:$0xff]   ;;  %v2221_v7 = vld [vmem:[%s3227_s5 + $0x30] sm:$0xff]  }
  0x8d   :  { %1912 = vmatpush3.bf16.msra.mxu0 %v2207_v8  ;;  %v2219_v26 = vld [vmem:[%s3225_s3] sm:$0xff]   ;;  %v297_v28 = vshrl.u32 %v296_v27, 7 }
  0x8e   :  { %1913 = vmatprep.subr.bf16.mxu0 %v2208_v12 }
  0x8f   :  { %v298_v29 = vsub.s32 0, %v297_v28  ;;  %v302_v31 = vsub.s32 1, %v297_v28 }
  0x91   :  { %1914 = vmatpush3.bf16.msra.mxu0 %v2209_v13  ;;  %v2222_v13 = vld [vmem:[%s3227_s5 + $0x28] sm:$0xff]  }
  0x92   :  { %1100 = vmatmul.mubr.bf16.gmra.mxu0 %v158_v36  ;;  %1915 = vmatprep.subr.bf16.mxu0 %v2210_v16 }
  0x93   :  { %1875 = vmatmul.mubr.msk.bf16.vlgmr.msra.gmra.mxu1 %vm796_vm0, %v146_v37  ;;  %1109 = vmatprep.mubr.bf16.mxu0 %v166_v38 }
  0x94   :  { %1202 = vmatprep.mubr.bf16.mxu1 %v2250_v30 }
  0x95   :  { %1916 = vmatpush3.bf16.msra.mxu0 %v2211_v17 }
  0x96   :  { %1917 = vmatprep.subr.bf16.mxu0 %v2212_v19 }
  0x99   :  { %1918 = vmatpush3.bf16.msra.mxu0 %v2213_v20 }
  0x9a   :  { %1110 = vmatmul.mubr.bf16.gmra.mxu0 %v165_v45  ;;  %1919 = vmatprep.subr.bf16.mxu0 %v2214_v21 }
  0x9b   :  { %1876 = vmatmul.mubr.msk.bf16.gmra.mxu1 %vm796_vm0, %v153_v46  ;;  %1119 = vmatprep.mubr.bf16.mxu0 %v173_v47 }
  0x9c   :  { %1212 = vmatprep.mubr.bf16.mxu1 %v2250_v30 }
  0x9d   :  { %1920 = vmatpush3.bf16.msra.mxu0 %v2215_v22 }
  0x9e   :  { %1921 = vmatprep.subr.bf16.mxu0 %v2216_v23 }
  0xa1   :  { %1922 = vmatpush3.bf16.msra.mxu0 %v2217_v24 }
  0xa2   :  { %1120 = vmatmul.mubr.bf16.gmra.mxu0 %v172_v54  ;;  %1923 = vmatprep.subr.bf16.mxu0 %v2218_v25 }
  0xa3   :  { %1877 = vmatmul.mubr.msk.bf16.gmra.mxu1 %vm796_vm0, %v160_v55  ;;  %1129 = vmatprep.mubr.bf16.mxu0 %v180_v56 }
  0xa4   :  { %1222 = vmatprep.mubr.bf16.mxu1 %v2250_v30 }
  0xa5   :  { %1924 = vmatpush3.bf16.msra.mxu0 %v2219_v26 }
  0xaa   :  { %1130 = vmatmul.mubr.bf16.gmra.mxu0 %v179_v61 }
  0xab   :  { %1878 = vmatmul.mubr.msk.bf16.gmra.mxu1 %vm796_vm0, %v167_v62 }
  0xac   :  { %1232 = vmatprep.mubr.bf16.mxu1 %v2250_v30 }
  0xb3   :  { %1879 = vmatmul.mubr.msk.bf16.gmra.mxu1 %vm796_vm0, %v174_v1 }
  0xb4   :  { %1242 = vmatprep.mubr.bf16.mxu1 %v2250_v30 }
  0xbb   :  { %1880 = vmatmul.mubr.msk.bf16.gmra.mxu1 %vm796_vm0, %v181_v6  ;;  %v2220_v6 = vld [vmem:[%s3227_s5 + $0x38] sm:$0xff]  }
  0xbc   :  { %1252 = vmatprep.mubr.bf16.mxu1 %v2250_v30  ;;  %1989 = vmatprep.subr.bf16.mxu1 %v2220_v6 }
  0xbd   :  { %1990 = vmatpush3.bf16.msra.mxu1 %v2220_v6 }
  0xbe   :  { %1991 = vmatprep.subr.bf16.mxu1 %v2221_v7 }
  0xc1   :  { %1992 = vmatpush3.bf16.msra.mxu1 %v2221_v7 }
  0xc2   :  { %1993 = vmatprep.subr.bf16.mxu1 %v2222_v13 }
  0xc3   :  { %1881 = vmatmul.mubr.msk.bf16.gmra.mxu1 %vm796_vm0, %v188_v11 }
  0xc4   :  { %1262 = vmatprep.mubr.bf16.mxu1 %v2250_v30  ;;  %v294_v30 = vld [vmem:[%s3224_s2] sm:$0x3] }
  0xc5   :  { %v2991_v32 = vrot.slane %v294_v30, %v298_v29  ;;  %v2993_v33 = vrot.slane %v294_v30, %v302_v31  ;;  %1994 = vmatpush3.bf16.msra.mxu1 %v2222_v13 }
  0xcb   :  { %1882 = vmatmul.mubr.msk.bf16.gmra.mxu1 %vm796_vm0, %v195_v18 }
 0x102   :  { %v855_v34 = vpop.f32.mrf.mxu0 }
 0x103   :  { %v968_v35 = vpop.f32.mrf.mxu1  ;;  %v856_v36 = vadd.f32 %v855_v34, %v2991_v32 }
 0x104   :  { %v857_v37 = vpop.f32.mrf.mxu0 }
 0x105   :  { %v970_v38 = vpop.f32.mrf.mxu1  ;;  %v2996_v39 = vadd.f32 %v968_v35, %v856_v36  ;;  %v858_v40 = vadd.f32 %v857_v37, %v2993_v33 }
 0x106   :  { %v2999_v41 = vpop.f32.mrf.mxu0 }
 0x107   :  { %v3001_v42 = vpop.f32.mrf.mxu1  ;;  %v3003_v43 = vadd.f32 %v970_v38, %v858_v40 }
 0x108   :  { %v3005_v44 = vpop.f32.mrf.mxu0 }
 0x109   :  { %v3007_v45 = vpop.f32.mrf.mxu1 }
 0x10a   :  { %v865_v46 = vpop.f32.mrf.mxu0 }
 0x10b   :  { %v978_v47 = vpop.f32.mrf.mxu1  ;;  %v866_v48 = vadd.f32 %v865_v46, %v2991_v32 }
 0x10c   :  { %v867_v49 = vpop.f32.mrf.mxu0 }
 0x10d   :  { %v980_v50 = vpop.f32.mrf.mxu1  ;;  %v3010_v51 = vadd.f32 %v978_v47, %v866_v48  ;;  %v868_v52 = vadd.f32 %v867_v49, %v2993_v33 }
 0x10e   :  { %v3013_v53 = vpop.f32.mrf.mxu0 }
 0x10f   :  { %v3015_v54 = vpop.f32.mrf.mxu1  ;;  %v3017_v55 = vadd.f32 %v980_v50, %v868_v52 }
 0x110   :  { %v3019_v56 = vpop.f32.mrf.mxu0 }
 0x111   :  { %v3021_v57 = vpop.f32.mrf.mxu1 }
 0x112   :  { %v875_v58 = vpop.f32.mrf.mxu0 }
 0x113   :  { %v988_v59 = vpop.f32.mrf.mxu1  ;;  %v876_v60 = vadd.f32 %v875_v58, %v2991_v32 }
 0x114   :  { %v877_v61 = vpop.f32.mrf.mxu0 }
 0x115   :  { %v990_v62 = vpop.f32.mrf.mxu1  ;;  %v3024_v63 = vadd.f32 %v988_v59, %v876_v60  ;;  %v878_v0 = vadd.f32 %v877_v61, %v2993_v33 }
 0x116   :  { %v3027_v1 = vpop.f32.mrf.mxu0 }
 0x117   :  { %v3029_v2 = vpop.f32.mrf.mxu1  ;;  %v3031_v3 = vadd.f32 %v990_v62, %v878_v0 }
 0x118   :  { %v3033_v4 = vpop.f32.mrf.mxu0 }
 0x119   :  { %v3035_v5 = vpop.f32.mrf.mxu1 }
 0x11a   :  { %v885_v8 = vpop.f32.mrf.mxu0 }
 0x11b   :  { %v998_v9 = vpop.f32.mrf.mxu1  ;;  %v886_v10 = vadd.f32 %v885_v8, %v2991_v32 }
 0x11c   :  { %v887_v11 = vpop.f32.mrf.mxu0 }
 0x11d   :  { %v1000_v12 = vpop.f32.mrf.mxu1  ;;  %v3047_v14 = vadd.f32 %v998_v9, %v886_v10  ;;  %v888_v15 = vadd.f32 %v887_v11, %v2993_v33 }
 0x11e   :  { %v3050_v16 = vpop.f32.mrf.mxu0 }
 0x11f   :  { %v3052_v17 = vpop.f32.mrf.mxu1  ;;  %v3054_v18 = vadd.f32 %v1000_v12, %v888_v15 }
 0x120   :  { %v3056_v19 = vpop.f32.mrf.mxu0 }
 0x121   :  { %v3058_v20 = vpop.f32.mrf.mxu1 }
 0x122   :  { %v895_v21 = vpop.f32.mrf.mxu0 }
 0x123   :  { %v1008_v22 = vpop.f32.mrf.mxu1  ;;  %v896_v23 = vadd.f32 %v895_v21, %v2991_v32 }
 0x124   :  { %v897_v24 = vpop.f32.mrf.mxu0 }
 0x125   :  { %v1010_v25 = vpop.f32.mrf.mxu1  ;;  %v3061_v26 = vadd.f32 %v1008_v22, %v896_v23  ;;  %v898_v27 = vadd.f32 %v897_v24, %v2993_v33 }
 0x126   :  { %v3064_v28 = vpop.f32.mrf.mxu0 }
 0x127   :  { %v3066_v29 = vpop.f32.mrf.mxu1  ;;  %v3068_v30 = vadd.f32 %v1010_v25, %v898_v27 }
 0x128   :  { %v3070_v31 = vpop.f32.mrf.mxu0 }
 0x129   :  { %v3072_v34 = vpop.f32.mrf.mxu1 }
 0x12a   :  { %v905_v35 = vpop.f32.mrf.mxu0 }
 0x12b   :  { %v1018_v36 = vpop.f32.mrf.mxu1  ;;  %v906_v37 = vadd.f32 %v905_v35, %v2991_v32 }
 0x12c   :  { %v907_v38 = vpop.f32.mrf.mxu0 }
 0x12d   :  { %v1020_v40 = vpop.f32.mrf.mxu1  ;;  %v3075_v46 = vadd.f32 %v1018_v36, %v906_v37  ;;  %v908_v47 = vadd.f32 %v907_v38, %v2993_v33 }
 0x12e   :  { %v3078_v48 = vpop.f32.mrf.mxu0 }
 0x12f   :  { %v3080_v49 = vpop.f32.mrf.mxu1  ;;  %v3082_v50 = vadd.f32 %v1020_v40, %v908_v47 }
 0x130   :  { %v3084_v52 = vpop.f32.mrf.mxu0 }
 0x131   :  { %v3086_v58 = vpop.f32.mrf.mxu1 }
 0x132   :  { %v915_v59 = vpop.f32.mrf.mxu0 }
 0x133   :  { %v1028_v60 = vpop.f32.mrf.mxu1  ;;  %v916_v61 = vadd.f32 %v915_v59, %v2991_v32 }
 0x134   :  { %v917_v62 = vpop.f32.mrf.mxu0 }
 0x135   :  { %v1030_v0 = vpop.f32.mrf.mxu1  ;;  %v1029_v6 = vadd.f32 %v1028_v60, %v916_v61  ;;  %v918_v7 = vadd.f32 %v917_v62, %v2993_v33 }
 0x136   :  { %v919_v8 = vpop.f32.mrf.mxu0 }
 0x137   :  { %v1032_v9 = vpop.f32.mrf.mxu1  ;;  %v1031_v10 = vadd.f32 %v1030_v0, %v918_v7  ;;  %v920_v40 = vadd.f32 %v919_v8, %v2991_v32 }
 0x138   :  { %v3090_v11 = vpop.f32.mrf.mxu0 }
 0x139   :  { %v3092_v12 = vpop.f32.mrf.mxu1  ;;  %v1033_v0 = vadd.f32 %v1032_v9, %v920_v40  ;;  %v860_v40 = vadd.f32 %v2999_v41, %v2991_v32 }
 0x13a   :  { %3230 = vst [vmem:[#allocation5_spill] sm:$0xff] %v3092_v12  ;;  %v925_v13 = vpop.f32.mrf.mxu0 }
 0x13b   :  { %v1038_v15 = vpop.f32.mrf.mxu1  ;;  %v926_v21 = vadd.f32 %v925_v13, %v2991_v32 }
 0x13c   :  { %v927_v22 = vpop.f32.mrf.mxu0 }
 0x13d   :  { %v1040_v23 = vpop.f32.mrf.mxu1  ;;  %v1039_v24 = vadd.f32 %v1038_v15, %v926_v21  ;;  %v928_v25 = vadd.f32 %v927_v22, %v2993_v33 }
 0x13e   :  { %v929_v27 = vpop.f32.mrf.mxu0 }
 0x13f   :  { %v1042_v35 = vpop.f32.mrf.mxu1  ;;  %v1041_v36 = vadd.f32 %v1040_v23, %v928_v25  ;;  %v930_v25 = vadd.f32 %v929_v27, %v2991_v32  ;;  %v862_v27 = vadd.f32 %v3005_v44, %v2993_v33 }
 0x140   :  { %v3096_v37 = vpop.f32.mrf.mxu0 }
 0x141   :  { %3231 = vst [vmem:[#allocation6_spill] sm:$0xff] %v3096_v37  ;;  %v3098_v38 = vpop.f32.mrf.mxu1 }
 0x142   :  { %3232 = vst [vmem:[#allocation7_spill] sm:$0xff] %v3098_v38  ;;  %v1081_v47 = vpop.f32.mrf.mxu0 }
 0x143   :  { %v1141_v59 = vpop.f32.mrf.mxu1 }
 0x144   :  { %v3101_v60 = vadd.f32 %v1141_v59, %v1029_v6  ;;  %v1083_v61 = vpop.f32.mrf.mxu0 }
 0x145   :  { %v1143_v62 = vpop.f32.mrf.mxu1  ;;  %v1084_v41 = vadd.f32 %v1083_v61, %v3003_v43 }
 0x146   :  { %3233 = vst [vmem:[#allocation8_spill] sm:$0xff] %v3101_v60  ;;  %v3103_v7 = vadd.f32 %v1143_v62, %v1031_v10  ;;  %v1085_v13 = vpop.f32.mrf.mxu0  ;;  %v1043_v60 = vadd.f32 %v1042_v35, %v930_v25  ;;  %v1082_v35 = vadd.f32 %v1081_v47, %v2996_v39 }
 0x147   :  { %v1145_v15 = vpop.f32.mrf.mxu1 }
 0x148   :  { %3234 = vst [vmem:[#allocation9_spill] sm:$0xff] %v3103_v7  ;;  %v3105_v21 = vadd.f32 %v1145_v15, %v1033_v0  ;;  %v1087_v22 = vpop.f32.mrf.mxu0 }
 0x149   :  { %v3107_v23 = vpop.f32.mrf.mxu1 }
 0x14a   :  { %3235 = vst [vmem:[#allocation10_spill] sm:$0xff] %v3105_v21  ;;  %3236 = vst [vmem:[#allocation11_spill] sm:$0xff] %v3107_v23  ;;  %v1091_v38 = vpop.f32.mrf.mxu0 }
 0x14b   :  { %v1151_v8 = vpop.f32.mrf.mxu1 }
 0x14c   :  { %v3110_v37 = vadd.f32 %v1151_v8, %v1039_v24  ;;  %v1093_v6 = vpop.f32.mrf.mxu0 }
 0x14d   :  { %v1153_v59 = vpop.f32.mrf.mxu1 }
 0x14e   :  { %3237 = vst [vmem:[#allocation12_spill] sm:$0xff] %v3110_v37  ;;  %v3112_v12 = vadd.f32 %v1153_v59, %v1041_v36  ;;  %v1095_v9 = vpop.f32.mrf.mxu0  ;;  %v973_v37 = vadd.f32 %v3001_v42, %v860_v40  ;;  %v975_v59 = vadd.f32 %v3007_v45, %v862_v27  ;;  %v872_v42 = vadd.f32 %v3019_v56, %v2993_v33 }
 0x14f   :  { %v1155_v10 = vpop.f32.mrf.mxu1  ;;  %v1094_v56 = vadd.f32 %v1093_v6, %v3017_v55 }
 0x150   :  { %3238 = vst [vmem:[#allocation13_spill] sm:$0xff] %v3112_v12  ;;  %v3116_v62 = vadd.f32 %v1155_v10, %v1043_v60  ;;  %v1097_v0 = vpop.f32.mrf.mxu0  ;;  %v1086_v60 = vadd.f32 %v1085_v13, %v973_v37  ;;  %v1088_v44 = vadd.f32 %v1087_v22, %v975_v59  ;;  %v1092_v13 = vadd.f32 %v1091_v38, %v3010_v51 }
 0x151   :  { %v3118_v15 = vpop.f32.mrf.mxu1  ;;  %v985_v22 = vadd.f32 %v3021_v57, %v872_v42  ;;  %v882_v38 = vadd.f32 %v3033_v4, %v2993_v33 }
 0x152   :  { %3239 = vst [vmem:[#allocation14_spill] sm:$0xff] %v3116_v62  ;;  %3240 = vst [vmem:[#allocation15_spill] sm:$0xff] %v3118_v15  ;;  %v1101_v24 = vpop.f32.mrf.mxu0  ;;  %v870_v62 = vadd.f32 %v3013_v53, %v2991_v32 }
 0x153   :  { %v1194_v8 = vpop.f32.mrf.mxu1 }
 0x154   :  { %v1103_v36 = vpop.f32.mrf.mxu0  ;;  %v1195_v10 = vadd.f32 %v1194_v8, %v1082_v35  ;;  %v983_v43 = vadd.f32 %v3015_v54, %v870_v62 }
 0x155   :  { %v1196_v25 = vpop.f32.mrf.mxu1  ;;  %v1104_v4 = vadd.f32 %v1103_v36, %v3031_v3 }
 0x156   :  { %v1105_v12 = vpop.f32.mrf.mxu0  ;;  %v1197_v21 = vadd.f32 %v1196_v25, %v1084_v41  ;;  %v1273_v40 = vmax.f32 %v1195_v10, 0.0  ;;  %v1096_v25 = vadd.f32 %v1095_v9, %v983_v43 }
 0x157   :  { %v1198_v15 = vpop.f32.mrf.mxu1 }
 0x158   :  { %v1199_v7 = vadd.f32 %v1198_v15, %v1086_v60  ;;  %v1107_v39 = vpop.f32.mrf.mxu0  ;;  %v1274_v53 = vmax.f32 %v1197_v21, 0.0  ;;  %v1098_v60 = vadd.f32 %v1097_v0, %v985_v22 }
 0x159   :  { %v1200_v47 = vpop.f32.mrf.mxu1 }
 0x15a   :  { %v1275_v23 = vmax.f32 %v1199_v7, 0.0  ;;  %v1201_v45 = vadd.f32 %v1200_v47, %v1088_v44  ;;  %v1111_v37 = vpop.f32.mrf.mxu0  ;;  %v880_v7 = vadd.f32 %v3027_v1, %v2991_v32  ;;  %v1102_v1 = vadd.f32 %v1101_v24, %v3024_v63 }
 0x15b   :  { %v1204_v61 = vpop.f32.mrf.mxu1  ;;  %v892_v63 = vadd.f32 %v3056_v19, %v2993_v33 }
 0x15c   :  { %v1305_v27 = vpack.c.bf16 %v1275_v23, %v1273_v40  ;;  %v1276_v8 = vmax.f32 %v1201_v45, 0.0  ;;  %v1113_v15 = vpop.f32.mrf.mxu0  ;;  %v1205_v41 = vadd.f32 %v1204_v61, %v1092_v13  ;;  %v993_v9 = vadd.f32 %v3029_v2, %v880_v7 }
 0x15d   :  { %v1206_v35 = vpop.f32.mrf.mxu1  ;;  %v995_v45 = vadd.f32 %v3035_v5, %v882_v38  ;;  %v1114_v19 = vadd.f32 %v1113_v15, %v3054_v18 }
 0x15e   :  { %v1306_v59 = vpack.c.bf16 %v1276_v8, %v1274_v53  ;;  %v1115_v54 = vpop.f32.mrf.mxu0  ;;  %v1207_v10 = vadd.f32 %v1206_v35, %v1094_v56  ;;  %v1277_v23 = vmax.f32 %v1205_v41, 0.0  ;;  %v1106_v13 = vadd.f32 %v1105_v12, %v993_v9 }
 0x15f   :  { %v1208_v62 = vpop.f32.mrf.mxu1  ;;  %v890_v8 = vadd.f32 %v3050_v16, %v2991_v32  ;;  %v1108_v22 = vadd.f32 %v1107_v39, %v995_v45  ;;  %v1112_v41 = vadd.f32 %v1111_v37, %v3047_v14  ;;  %v902_v14 = vadd.f32 %v3070_v31, %v2993_v33 }
 0x160   :  { %v1209_v51 = vadd.f32 %v1208_v62, %v1096_v25  ;;  %1488 = vmatprep.mubr.bf16.mxu0 %v1306_v59  ;;  %v1117_v57 = vpop.f32.mrf.mxu0  ;;  %v1278_v47 = vmax.f32 %v1207_v10, 0.0  ;;  %v1005_v62 = vadd.f32 %v3058_v20, %v892_v63 }
 0x161   :  { %v1210_v21 = vpop.f32.mrf.mxu1  ;;  %1489 = vmatmul.mubr.bf16.vlgmr.msra.gmra.mxu0 %v1305_v27  ;;  %v1003_v12 = vadd.f32 %v3052_v17, %v890_v8 }
 0x162   :  { %v1279_v55 = vmax.f32 %v1209_v51, 0.0  ;;  %v1211_v6 = vadd.f32 %v1210_v21, %v1098_v60  ;;  %v1121_v44 = vpop.f32.mrf.mxu0  ;;  %v1118_v17 = vadd.f32 %v1117_v57, %v1005_v62 }
 0x163   :  { %v1214_v42 = vpop.f32.mrf.mxu1  ;;  %v1116_v51 = vadd.f32 %v1115_v54, %v1003_v12 }
 0x164   :  { %v1307_v0 = vpack.c.bf16 %v1279_v55, %v1277_v23  ;;  %v1280_v40 = vmax.f32 %v1211_v6, 0.0  ;;  %v1123_v43 = vpop.f32.mrf.mxu0  ;;  %v1215_v27 = vadd.f32 %v1214_v42, %v1102_v1  ;;  %v900_v23 = vadd.f32 %v3064_v28, %v2991_v32 }
 0x165   :  { %v1216_v61 = vpop.f32.mrf.mxu1  ;;  %v1124_v31 = vadd.f32 %v1123_v43, %v3068_v30 }
 0x166   :  { %v1308_v53 = vpack.c.bf16 %v1280_v40, %v1278_v47  ;;  %v1217_v35 = vadd.f32 %v1216_v61, %v1104_v4  ;;  %v1125_v24 = vpop.f32.mrf.mxu0  ;;  %v1281_v25 = vmax.f32 %v1215_v27, 0.0  ;;  %v1013_v15 = vadd.f32 %v3066_v29, %v900_v23  ;;  %v3241_v23 = vld [vmem:[#allocation5_spill] sm:$0xff] }
 0x167   :  { %v1218_v2 = vpop.f32.mrf.mxu1  ;;  %v1122_v47 = vadd.f32 %v1121_v44, %v3061_v26  ;;  %v1015_v40 = vadd.f32 %v3072_v34, %v902_v14  ;;  %v910_v27 = vadd.f32 %v3078_v48, %v2991_v32  ;;  %v912_v26 = vadd.f32 %v3084_v52, %v2993_v33 }
 0x168   :  { %v1219_v56 = vadd.f32 %v1218_v2, %v1106_v13  ;;  %1496 = vmatprep.mubr.bf16.mxu0 %v1308_v53  ;;  %v1282_v16 = vmax.f32 %v1217_v35, 0.0  ;;  %v1127_v60 = vpop.f32.mrf.mxu0  ;;  %v1126_v4 = vadd.f32 %v1125_v24, %v1013_v15 }
 0x169   :  { %v1220_v5 = vpop.f32.mrf.mxu1  ;;  %1497 = vmatmul.mubr.bf16.gmra.mxu0 %v1307_v0  ;;  %v1128_v29 = vadd.f32 %v1127_v60, %v1015_v40  ;;  %v1023_v43 = vadd.f32 %v3080_v49, %v910_v27 }
 0x16a   :  { %v1283_v59 = vmax.f32 %v1219_v56, 0.0  ;;  %v1221_v3 = vadd.f32 %v1220_v5, %v1108_v22  ;;  %v1131_v37 = vpop.f32.mrf.mxu0 }
 0x16b   :  { %v1224_v36 = vpop.f32.mrf.mxu1  ;;  %v1132_v24 = vadd.f32 %v1131_v37, %v3075_v46  ;;  %v922_v46 = vadd.f32 %v3090_v11, %v2993_v33  ;;  %v3243_v37 = vld [vmem:[#allocation11_spill] sm:$0xff] }
 0x16c   :  { %v1309_v7 = vpack.c.bf16 %v1283_v59, %v1281_v25  ;;  %v1284_v39 = vmax.f32 %v1221_v3, 0.0  ;;  %v1225_v21 = vadd.f32 %v1224_v36, %v1112_v41  ;;  %v1133_v45 = vpop.f32.mrf.mxu0  ;;  %v1025_v25 = vadd.f32 %v3086_v58, %v912_v26 }
 0x16d   :  { %v1226_v10 = vpop.f32.mrf.mxu1  ;;  %v1134_v52 = vadd.f32 %v1133_v45, %v3082_v50 }
 0x16e   :  { %v1310_v38 = vpack.c.bf16 %v1284_v39, %v1282_v16  ;;  %v1227_v6 = vadd.f32 %v1226_v10, %v1114_v19  ;;  %v1285_v42 = vmax.f32 %v1225_v21, 0.0  ;;  %v1135_v44 = vpop.f32.mrf.mxu0 }
 0x16f   :  { %v1228_v55 = vpop.f32.mrf.mxu1  ;;  %v1136_v12 = vadd.f32 %v1135_v44, %v1023_v43  ;;  %v3250_v44 = vld [vmem:[#allocation13_spill] sm:$0xff] }
 0x170   :  { %v1229_v9 = vadd.f32 %v1228_v55, %v1116_v51  ;;  %1504 = vmatprep.mubr.bf16.mxu0 %v1310_v38  ;;  %v1286_v28 = vmax.f32 %v1227_v6, 0.0  ;;  %v1137_v59 = vpop.f32.mrf.mxu0  ;;  %v1035_v55 = vadd.f32 %v3241_v23, %v922_v46  ;;  %v3242_v6 = vld [vmem:[#allocation8_spill] sm:$0xff] }
 0x171   :  { %v1230_v20 = vpop.f32.mrf.mxu1  ;;  %1505 = vmatmul.mubr.bf16.gmra.mxu0 %v1309_v7  ;;  %v1138_v7 = vadd.f32 %v1137_v59, %v1025_v25  ;;  %v2223_v25 = vld [vmem:[%s3227_s5 + $0x20] sm:$0xff]   ;;  %v2224_v59 = vld [vmem:[%s3227_s5 + $0x18] sm:$0xff]  }
 0x172   :  { %v1287_v1 = vmax.f32 %v1229_v9, 0.0  ;;  %v1231_v18 = vadd.f32 %v1230_v20, %v1118_v17  ;;  %v1148_v20 = vadd.f32 %v3243_v37, %v1035_v55  ;;  %1995 = vmatprep.subr.bf16.mxu1 %v2223_v25 }
 0x173   :  { %v1234_v54 = vpop.f32.mrf.mxu1  ;;  %1996 = vmatpush3.bf16.msra.mxu1 %v2223_v25 }
 0x174   :  { %v1311_v0 = vpack.c.bf16 %v1287_v1, %v1285_v42  ;;  %v1288_v57 = vmax.f32 %v1231_v18, 0.0  ;;  %v1235_v53 = vadd.f32 %v1234_v54, %v1122_v47  ;;  %v3244_v42 = vld [vmem:[#allocation9_spill] sm:$0xff]  ;;  %v3245_v18 = vld [vmem:[#allocation10_spill] sm:$0xff]  ;;  %1997 = vmatprep.subr.bf16.mxu1 %v2224_v59 }
 0x175   :  { %v1236_v61 = vpop.f32.mrf.mxu1  ;;  %v3246_v54 = vld [vmem:[#allocation6_spill] sm:$0xff] }
 0x176   :  { %v1312_v13 = vpack.c.bf16 %v1288_v57, %v1286_v28  ;;  %v1237_v2 = vadd.f32 %v1236_v61, %v1124_v31  ;;  %v1289_v35 = vmax.f32 %v1235_v53, 0.0  ;;  %v932_v47 = vadd.f32 %v3246_v54, %v2993_v33 }
 0x177   :  { %v1238_v8 = vpop.f32.mrf.mxu1  ;;  %1998 = vmatpush3.bf16.msra.mxu1 %v2224_v59 }
 0x178   :  { %v1239_v22 = vadd.f32 %v1238_v8, %v1126_v4  ;;  %1512 = vmatprep.mubr.bf16.mxu0 %v1312_v13  ;;  %v1290_v32 = vmax.f32 %v1237_v2, 0.0  ;;  %v3247_v13 = vld [vmem:[#allocation7_spill] sm:$0xff]  ;;  %v3248_v8 = vld [vmem:[#allocation12_spill] sm:$0xff] }
 0x179   :  { %v1240_v34 = vpop.f32.mrf.mxu1  ;;  %1513 = vmatmul.mubr.bf16.gmra.mxu0 %v1311_v0  ;;  %v1045_v53 = vadd.f32 %v3247_v13, %v932_v47 }
 0x17a   :  { %v1291_v56 = vmax.f32 %v1239_v22, 0.0  ;;  %v1241_v30 = vadd.f32 %v1240_v34, %v1128_v29  ;;  %v3249_v22 = vld [vmem:[#allocation15_spill] sm:$0xff] }
 0x17b   :  { %v1244_v63 = vpop.f32.mrf.mxu1  ;;  %v1158_v26 = vadd.f32 %v3249_v22, %v1045_v53 }
 0x17c   :  { %v1313_v48 = vpack.c.bf16 %v1291_v56, %v1289_v35  ;;  %v1292_v5 = vmax.f32 %v1241_v30, 0.0  ;;  %v1245_v41 = vadd.f32 %v1244_v63, %v1132_v24  ;;  %v3251_v35 = vld [vmem:[#allocation14_spill] sm:$0xff] }
 0x17d   :  { %v1246_v3 = vpop.f32.mrf.mxu1 }
 0x17e   :  { %v1314_v36 = vpack.c.bf16 %v1292_v5, %v1290_v32  ;;  %v1247_v39 = vadd.f32 %v1246_v3, %v1134_v52  ;;  %v1293_v60 = vmax.f32 %v1245_v41, 0.0  ;;  %v2225_v3 = vld [vmem:[%s3227_s5 + $0x10] sm:$0xff]   ;;  %v2226_v52 = vld [vmem:[%s3227_s5 + $0x8] sm:$0xff]  }
 0x17f   :  { %v1248_v16 = vpop.f32.mrf.mxu1  ;;  %1999 = vmatprep.subr.bf16.mxu1 %v2225_v3 }
 0x180   :  { %v1249_v62 = vadd.f32 %v1248_v16, %v1136_v12  ;;  %1520 = vmatprep.mubr.bf16.mxu0 %v1314_v36  ;;  %v1294_v51 = vmax.f32 %v1247_v39, 0.0  ;;  %2000 = vmatpush3.bf16.msra.mxu1 %v2225_v3  ;;  %v2227_v12 = vld [vmem:[%s3227_s5] sm:$0xff]  }
 0x181   :  { %v1250_v49 = vpop.f32.mrf.mxu1  ;;  %1521 = vmatmul.mubr.bf16.gmra.mxu0 %v1313_v48  ;;  %2001 = vmatprep.subr.bf16.mxu1 %v2226_v52 }
 0x182   :  { %v1295_v10 = vmax.f32 %v1249_v62, 0.0  ;;  %v1251_v58 = vadd.f32 %v1250_v49, %v1138_v7  ;;  %v3198_v7 = vld [vmem:[%s3226_s4] ss:$0 sm:$0xff] }
 0x183   :  { %v1254_v19 = vpop.f32.mrf.mxu1 }
 0x184   :  { %v1315_v38 = vpack.c.bf16 %v1295_v10, %v1293_v60  ;;  %v1296_v50 = vmax.f32 %v1251_v58, 0.0  ;;  %v1255_v9 = vadd.f32 %v1254_v19, %v3242_v6  ;;  %2002 = vmatpush3.bf16.msra.mxu1 %v2226_v52 }
 0x185   :  { %v1256_v21 = vpop.f32.mrf.mxu1  ;;  %2003 = vmatprep.subr.bf16.mxu1 %v2227_v12 }
 0x186   :  { %v1316_v17 = vpack.c.bf16 %v1296_v50, %v1294_v51  ;;  %v1257_v1 = vadd.f32 %v1256_v21, %v3244_v42  ;;  %v1297_v28 = vmax.f32 %v1255_v9, 0.0 }
 0x187   :  { %v1258_v14 = vpop.f32.mrf.mxu1 }
 0x188   :  { %v1259_v11 = vadd.f32 %v1258_v14, %v3245_v18  ;;  %1528 = vmatprep.mubr.bf16.mxu0 %v1316_v17  ;;  %v1298_v45 = vmax.f32 %v1257_v1, 0.0  ;;  %2004 = vmatpush3.bf16.msra.mxu1 %v2227_v12 }
 0x189   :  { %v1260_v15 = vpop.f32.mrf.mxu1  ;;  %1529 = vmatmul.mubr.bf16.gmra.mxu0 %v1315_v38 }
 0x18a   :  { %v1299_v0 = vmax.f32 %v1259_v11, 0.0  ;;  %v1261_v57 = vadd.f32 %v1260_v15, %v1148_v20 }
 0x18b   :  { %v1264_v40 = vpop.f32.mrf.mxu1 }
 0x18c   :  { %v1317_v61 = vpack.c.bf16 %v1299_v0, %v1297_v28  ;;  %v1300_v31 = vmax.f32 %v1261_v57, 0.0  ;;  %v1265_v29 = vadd.f32 %v1264_v40, %v3248_v8 }
 0x18d   :  { %v1266_v4 = vpop.f32.mrf.mxu1 }
 0x18e   :  { %v1318_v27 = vpack.c.bf16 %v1300_v31, %v1298_v45  ;;  %v1267_v34 = vadd.f32 %v1266_v4, %v3250_v44  ;;  %v1301_v30 = vmax.f32 %v1265_v29, 0.0 }
 0x18f   :  { %v1268_v2 = vpop.f32.mrf.mxu1 }
 0x190   :  { %v1269_v33 = vadd.f32 %v1268_v2, %v3251_v35  ;;  %1536 = vmatprep.mubr.bf16.mxu0 %v1318_v27  ;;  %v1302_v24 = vmax.f32 %v1267_v34, 0.0 }
 0x191   :  { %v1270_v56 = vpop.f32.mrf.mxu1  ;;  %1537 = vmatmul.mubr.bf16.gmra.mxu0 %v1317_v61 }
 0x192   :  { %v1303_v43 = vmax.f32 %v1269_v33, 0.0  ;;  %v1271_v63 = vadd.f32 %v1270_v56, %v1158_v26 }
 0x194   :  { %v1319_v32 = vpack.c.bf16 %v1303_v43, %v1301_v30  ;;  %v1304_v48 = vmax.f32 %v1271_v63, 0.0 }
 0x196   :  { %v1320_v5 = vpack.c.bf16 %v1304_v48, %v1302_v24 }
 0x198   :  { %1544 = vmatprep.mubr.bf16.mxu0 %v1320_v5 }
 0x199   :  { %1545 = vmatmul.mubr.bf16.gmra.mxu0 %v1319_v32 }
 0x221   :  { %v1925_v36 = vpop.f32.mrf.mxu0 }
 0x223   :  { %v1926_v41 = vpop.f32.mrf.mxu0 }
 0x224   :  { %v1927_v16 = vadd.f32 %v1926_v41, %v1925_v36 }
 0x225   :  { %v1928_v39 = vpop.f32.mrf.mxu0 }
 0x226   :  { %v1491_v49 = vadd.f32 %v1927_v16, %v3198_v7 }
 0x227   :  { %v1929_v62 = vpop.f32.mrf.mxu0 }
 0x228   :  { %v1930_v46 = vadd.f32 %v1929_v62, %v1928_v39  ;;  %v1553_v19 = vmax.f32 %v1491_v49, 0.0 }
 0x229   :  { %v1931_v60 = vpop.f32.mrf.mxu0 }
 0x22a   :  { %v1494_v10 = vadd.f32 %v1930_v46, %v3198_v7 }
 0x22b   :  { %v1932_v58 = vpop.f32.mrf.mxu0 }
 0x22c   :  { %v1554_v51 = vmax.f32 %v1494_v10, 0.0  ;;  %v1933_v38 = vadd.f32 %v1932_v58, %v1931_v60 }
 0x22d   :  { %v1934_v50 = vpop.f32.mrf.mxu0 }
 0x22e   :  { %v1569_v21 = vpack.c.bf16 %v1554_v51, %v1553_v19  ;;  %v1499_v55 = vadd.f32 %v1933_v38, %v3198_v7 }
 0x22f   :  { %v1935_v23 = vpop.f32.mrf.mxu0 }
 0x230   :  { %v1936_v17 = vadd.f32 %v1935_v23, %v1934_v50  ;;  %2005 = vmatprep.mubr.bf16.mxu1 %v1569_v21  ;;  %v1555_v37 = vmax.f32 %v1499_v55, 0.0 }
 0x231   :  { %v1937_v6 = vpop.f32.mrf.mxu0 }
 0x232   :  { %v1502_v9 = vadd.f32 %v1936_v17, %v3198_v7 }
 0x233   :  { %v1938_v14 = vpop.f32.mrf.mxu0 }
 0x234   :  { %v1556_v20 = vmax.f32 %v1502_v9, 0.0  ;;  %v1939_v42 = vadd.f32 %v1938_v14, %v1937_v6 }
 0x235   :  { %v1940_v1 = vpop.f32.mrf.mxu0 }
 0x236   :  { %v1570_v18 = vpack.c.bf16 %v1556_v20, %v1555_v37  ;;  %v1507_v15 = vadd.f32 %v1939_v42, %v3198_v7 }
 0x237   :  { %v1941_v11 = vpop.f32.mrf.mxu0 }
 0x238   :  { %v1942_v54 = vadd.f32 %v1941_v11, %v1940_v1  ;;  %2006 = vmatmul.mubr.bf16.vlgmr.msra.gmra.mxu1 %v1570_v18  ;;  %v1557_v57 = vmax.f32 %v1507_v15, 0.0  ;;  %v1900_v18 = vld [vmem:[%s3228_s6] ss:$0 sm:$0xff]  ;;  %s2251_s6 = smov [#allocation2]  }
 0x239   :  { %v1943_v47 = vpop.f32.mrf.mxu0  ;;  %s1766_s27 = sshll.u32 %s2251_s6, 4  ;;  %s1767_s27 = int_to_ptr.vmem [resolvable:$true] %s1766_s27 }
 0x23a   :  { %v1510_v28 = vadd.f32 %v1942_v54, %v3198_v7  ;;  %s2228_s28 = scalar_lea.vmem %s1767_s27, 2048  ;;  %p2233_p1 = scmp.lt.s32.totalorder %s1767_s27, %s1767_s27 }
 0x23b   :  { %v1944_v0 = vpop.f32.mrf.mxu0  ;;  %p2229_p0 = scmp.ne.s32.totalorder %s1767_s27, %s2228_s28  ;;  %p2234_p2 = scmp.lt.s32.totalorder %s2228_s28, %s2228_s28 }
 0x23c   :  { %v1558_v40 = vmax.f32 %v1510_v28, 0.0  ;;  %v1945_v45 = vadd.f32 %v1944_v0, %v1943_v47 }
 0x23d   :  { %v1946_v61 = vpop.f32.mrf.mxu0  ;;  %p2235_p3 = por %p2234_p2, %p2233_p1 }
 0x23e   :  { %v1571_v31 = vpack.c.bf16 %v1558_v40, %v1557_v57  ;;  %v1515_v13 = vadd.f32 %v1945_v45, %v3198_v7 }
 0x23f   :  { %v1947_v4 = vpop.f32.mrf.mxu0  ;;  %p2236_p4 = pnand %p2235_p3, %p2229_p0 }
 0x240   :  { %v1948_v53 = vadd.f32 %v1947_v4, %v1946_v61  ;;  %2009 = vmatprep.mubr.bf16.mxu1 %v1571_v31  ;;  %v1559_v2 = vmax.f32 %v1515_v13, 0.0 }
 0x241   :  { %v1949_v27 = vpop.f32.mrf.mxu0 }
 0x242   :  { %v1518_v8 = vadd.f32 %v1948_v53, %v3198_v7 }
 0x243   :  { %v1950_v29 = vpop.f32.mrf.mxu0 }
 0x244   :  { %v1560_v22 = vmax.f32 %v1518_v8, 0.0  ;;  %v1951_v26 = vadd.f32 %v1950_v29, %v1949_v27 }
 0x245   :  { %v1952_v44 = vpop.f32.mrf.mxu0 }
 0x246   :  { %v1572_v34 = vpack.c.bf16 %v1560_v22, %v1559_v2  ;;  %v1523_v33 = vadd.f32 %v1951_v26, %v3198_v7 }
 0x247   :  { %v1953_v35 = vpop.f32.mrf.mxu0 }
 0x248   :  { %v1954_v56 = vadd.f32 %v1953_v35, %v1952_v44  ;;  %2010 = vmatmul.mubr.bf16.gmra.mxu1 %v1572_v34  ;;  %v1561_v24 = vmax.f32 %v1523_v33, 0.0 }
 0x249   :  { %v1955_v30 = vpop.f32.mrf.mxu0 }
 0x24a   :  { %v1526_v43 = vadd.f32 %v1954_v56, %v3198_v7 }
 0x24b   :  { %v1956_v63 = vpop.f32.mrf.mxu0 }
 0x24c   :  { %v1562_v32 = vmax.f32 %v1526_v43, 0.0  ;;  %v1957_v48 = vadd.f32 %v1956_v63, %v1955_v30 }
 0x24d   :  { %v1958_v5 = vpop.f32.mrf.mxu0 }
 0x24e   :  { %v1573_v25 = vpack.c.bf16 %v1562_v32, %v1561_v24  ;;  %v1531_v3 = vadd.f32 %v1957_v48, %v3198_v7 }
 0x24f   :  { %v1959_v59 = vpop.f32.mrf.mxu0 }
 0x250   :  { %v1960_v52 = vadd.f32 %v1959_v59, %v1958_v5  ;;  %2013 = vmatprep.mubr.bf16.mxu1 %v1573_v25  ;;  %v1563_v16 = vmax.f32 %v1531_v3, 0.0 }
 0x251   :  { %v1961_v12 = vpop.f32.mrf.mxu0 }
 0x252   :  { %v1534_v36 = vadd.f32 %v1960_v52, %v3198_v7 }
 0x253   :  { %v1962_v41 = vpop.f32.mrf.mxu0 }
 0x254   :  { %v1564_v39 = vmax.f32 %v1534_v36, 0.0  ;;  %v1963_v62 = vadd.f32 %v1962_v41, %v1961_v12 }
 0x255   :  { %v1964_v49 = vpop.f32.mrf.mxu0 }
 0x256   :  { %v1574_v46 = vpack.c.bf16 %v1564_v39, %v1563_v16  ;;  %v1539_v10 = vadd.f32 %v1963_v62, %v3198_v7 }
 0x257   :  { %v1965_v60 = vpop.f32.mrf.mxu0 }
 0x258   :  { %v1966_v58 = vadd.f32 %v1965_v60, %v1964_v49  ;;  %2014 = vmatmul.mubr.bf16.gmra.mxu1 %v1574_v46  ;;  %v1565_v50 = vmax.f32 %v1539_v10, 0.0 }
 0x259   :  { %v1967_v19 = vpop.f32.mrf.mxu0 }
 0x25a   :  { %v1542_v51 = vadd.f32 %v1966_v58, %v3198_v7 }
 0x25b   :  { %v1968_v38 = vpop.f32.mrf.mxu0 }
 0x25c   :  { %v1566_v21 = vmax.f32 %v1542_v51, 0.0  ;;  %v1969_v23 = vadd.f32 %v1968_v38, %v1967_v19 }
 0x25d   :  { %v1970_v55 = vpop.f32.mrf.mxu0 }
 0x25e   :  { %v1575_v17 = vpack.c.bf16 %v1566_v21, %v1565_v50  ;;  %v1547_v9 = vadd.f32 %v1969_v23, %v3198_v7 }
 0x25f   :  { %v1971_v6 = vpop.f32.mrf.mxu0 }
 0x260   :  { %v1972_v14 = vadd.f32 %v1971_v6, %v1970_v55  ;;  %2017 = vmatprep.mubr.bf16.mxu1 %v1575_v17  ;;  %v1567_v20 = vmax.f32 %v1547_v9, 0.0 }
 0x262   :  { %v1550_v37 = vadd.f32 %v1972_v14, %v3198_v7 }
 0x264   :  { %v1568_v42 = vmax.f32 %v1550_v37, 0.0 }
 0x266   :  { %v1576_v1 = vpack.c.bf16 %v1568_v42, %v1567_v20 }
 0x268   :  { %2018 = vmatmul.mubr.bf16.gmra.mxu1 %v1576_v1 }
 0x2f8   :  { %v2007_v11 = vpop.f32.mrf.mxu1 }
 0x2f9   :  { %v1691_v15 = vadd.f32 %v2007_v11, %v1900_v18 }
 0x2fa   :  { %v1682_v54 = vpop.f32.mrf.mxu1 }
 0x2fb   :  { %1747 = vst [vmem:[#allocation2 + $0x10] sm:$0xff] %v1691_v15  ;;  %v1683_v47 = vadd.f32 %v1900_v18, %v1682_v54 }
 0x2fc   :  { %v2008_v28 = vpop.f32.mrf.mxu1 }
 0x2fd   :  { %1745 = vst [vmem:[#allocation2] sm:$0xff] %v1683_v47  ;;  %v1694_v0 = vadd.f32 %v2008_v28, %v1900_v18 }
 0x2fe   :  { %v1685_v57 = vpop.f32.mrf.mxu1 }
 0x2ff   :  { %1748 = vst [vmem:[#allocation2 + $0x18] sm:$0xff] %v1694_v0  ;;  %v1686_v40 = vadd.f32 %v1900_v18, %v1685_v57 }
 0x301   :  { %1746 = vst [vmem:[#allocation2 + $0x8] sm:$0xff] %v1686_v40 }
 0x308   :  { %v2011_v7 = vpop.f32.mrf.mxu1 }
 0x309   :  { %v1707_v45 = vadd.f32 %v2011_v7, %v1900_v18 }
 0x30a   :  { %v1698_v61 = vpop.f32.mrf.mxu1 }
 0x30b   :  { %1751 = vst [vmem:[#allocation2 + $0x30] sm:$0xff] %v1707_v45  ;;  %v1699_v31 = vadd.f32 %v1900_v18, %v1698_v61 }
 0x30c   :  { %v2012_v4 = vpop.f32.mrf.mxu1 }
 0x30d   :  { %1749 = vst [vmem:[#allocation2 + $0x20] sm:$0xff] %v1699_v31  ;;  %v1710_v13 = vadd.f32 %v2012_v4, %v1900_v18 }
 0x30e   :  { %v1701_v53 = vpop.f32.mrf.mxu1 }
 0x30f   :  { %1752 = vst [vmem:[#allocation2 + $0x38] sm:$0xff] %v1710_v13  ;;  %v1702_v27 = vadd.f32 %v1900_v18, %v1701_v53 }
 0x311   :  { %1750 = vst [vmem:[#allocation2 + $0x28] sm:$0xff] %v1702_v27 }
 0x318   :  { %v2015_v8 = vpop.f32.mrf.mxu1 }
 0x319   :  { %v1723_v29 = vadd.f32 %v2015_v8, %v1900_v18 }
 0x31a   :  { %v1714_v2 = vpop.f32.mrf.mxu1 }
 0x31b   :  { %1755 = vst [vmem:[#allocation2 + $0x50] sm:$0xff] %v1723_v29  ;;  %v1715_v22 = vadd.f32 %v1900_v18, %v1714_v2 }
 0x31c   :  { %v2016_v26 = vpop.f32.mrf.mxu1 }
 0x31d   :  { %1753 = vst [vmem:[#allocation2 + $0x40] sm:$0xff] %v1715_v22  ;;  %v1726_v44 = vadd.f32 %v2016_v26, %v1900_v18 }
 0x31e   :  { %v1717_v34 = vpop.f32.mrf.mxu1 }
 0x31f   :  { %1756 = vst [vmem:[#allocation2 + $0x58] sm:$0xff] %v1726_v44  ;;  %v1718_v35 = vadd.f32 %v1900_v18, %v1717_v34 }
 0x321   :  { %1754 = vst [vmem:[#allocation2 + $0x48] sm:$0xff] %v1718_v35 }
 0x328   :  { %v2019_v33 = vpop.f32.mrf.mxu1 }
 0x329   :  { %v1739_v56 = vadd.f32 %v2019_v33, %v1900_v18 }
 0x32a   :  { %v1730_v30 = vpop.f32.mrf.mxu1 }
 0x32b   :  { %1759 = vst [vmem:[#allocation2 + $0x70] sm:$0xff] %v1739_v56  ;;  %v1731_v43 = vadd.f32 %v1900_v18, %v1730_v30 }
 0x32c   :  { %v2020_v63 = vpop.f32.mrf.mxu1 }
 0x32d   :  { %1757 = vst [vmem:[#allocation2 + $0x60] sm:$0xff] %v1731_v43  ;;  %v1742_v24 = vadd.f32 %v2020_v63, %v1900_v18 }
 0x32e   :  { %v1733_v32 = vpop.f32.mrf.mxu1 }
 0x32f   :  { %1760 = vst [vmem:[#allocation2 + $0x78] sm:$0xff] %v1742_v24  ;;  %v1734_v48 = vadd.f32 %v1900_v18, %v1733_v32 }
 0x331   :  { %1758 = vst [vmem:[#allocation2 + $0x68] sm:$0xff] %v1734_v48 }
 0x332   :  { %2239 = shalt.err (!%p2236_p4)
}
 0x333   :  { %s2252_s29 = smov 128   ;;  %s2253_s30 = smov 8  }
 0x334   :  { %1772 = dma.vmem_to_hbm [thread:$0]  %s1767_s27, 2048, %s3229_s7, [#allocation3], %s2252_s29, %s2252_s29, %s2253_s30  }
 0x335   :  { %2248 = dma.done.wait [#allocation3], 2048  }
 0x336   :  { %2249 = vsyncadd [#allocation3], 4294965248 }
 0x337   :  { %1776 = vsyncpa [#allocation3], 1 }

</bundles_post_ra>
